<compile_context>
chip_gen: v7x
topology: tpu7x:2x2x1
jax: 0.10.0
libtpu: 0.0.40
codegen_flags: <defaults>
</compile_context>

<pallas_src>
import jax
import jax.numpy as jnp
from jax.experimental import pallas as pl
from jax.experimental.pallas import tpu as pltpu


# ---------------------------------------------------------------------------
# Kernel 1: fused conv-as-GEMM + bias + ReLU + 2x2/2 max pool  (M-gridded)
# ---------------------------------------------------------------------------
def _conv_relu_pool_kernel(p_ref, w_ref, b_ref, o_ref):
    """p_ref: (4, K, tm) bf16 -- im2col patches for this M tile; leading axis =
                                 position inside each 2x2 pool window
       w_ref: (OC, K) bf16    -- flattened conv weight (constant across grid)
       b_ref: (OC, 1) f32     -- bias
       o_ref: (OC, tm) bf16   -- pooled, ReLU'd output tile

    maxpool2x2(relu(conv + b)) == relu(max_q(W @ P_q) + b)  (ReLU monotone,
    bias constant over the window).  Running max keeps only one f32
    accumulator tile live at a time.
    """
    w = w_ref[...]
    y = jnp.dot(w, p_ref[0], preferred_element_type=jnp.float32)
    y = jnp.maximum(y, jnp.dot(w, p_ref[1], preferred_element_type=jnp.float32))
    y = jnp.maximum(y, jnp.dot(w, p_ref[2], preferred_element_type=jnp.float32))
    y = jnp.maximum(y, jnp.dot(w, p_ref[3], preferred_element_type=jnp.float32))
    y = jnp.maximum(y + b_ref[...], 0.0)          # fp32 epilogue
    o_ref[...] = y.astype(o_ref.dtype)


def _choose_m_tile(m, cap=1024):
    """128-aligned lane tile (<= cap) and the padded M that it divides."""
    tm = min(cap, pl.cdiv(m, 128) * 128)
    m_pad = pl.cdiv(m, tm) * tm
    return tm, m_pad


def conv_relu_pool(patches4, w_mat, b, *, m_tile):
    q, k, m_pad = patches4.shape
    oc = w_mat.shape[0]
    assert m_pad % m_tile == 0 and m_tile % 128 == 0
    return pl.pallas_call(
        _conv_relu_pool_kernel,
        out_shape=jax.ShapeDtypeStruct((oc, m_pad), jnp.bfloat16),
        grid=(m_pad // m_tile,),
        in_specs=[
            pl.BlockSpec((q, k, m_tile), lambda i: (0, 0, i)),
            pl.BlockSpec((oc, k), lambda i: (0, 0)),
            pl.BlockSpec((oc, 1), lambda i: (0, 0)),
        ],
        out_specs=pl.BlockSpec((oc, m_tile), lambda i: (0, i)),
        compiler_params=pltpu.CompilerParams(
            dimension_semantics=("parallel",)),
    )(patches4, w_mat, b)


# ---------------------------------------------------------------------------
# Kernel 2: fused fc1 -> ReLU -> fc2 -> ReLU -> fc3 (intermediates in VMEM)
# ---------------------------------------------------------------------------
def _mlp_kernel(x_ref, w1_ref, b1_ref, w2_ref, b2_ref, w3_ref, b3_ref, o_ref):
    h = jnp.dot(x_ref[...], w1_ref[...], preferred_element_type=jnp.float32)
    h = jnp.maximum(h + b1_ref[...], 0.0)
    h = jnp.dot(h.astype(jnp.bfloat16), w2_ref[...],
                preferred_element_type=jnp.float32)
    h = jnp.maximum(h + b2_ref[...], 0.0)
    h = jnp.dot(h.astype(jnp.bfloat16), w3_ref[...],
                preferred_element_type=jnp.float32)
    o_ref[...] = (h + b3_ref[...]).astype(o_ref.dtype)


def mlp(x, w1, b1, w2, b2, w3, b3):
    def full(a):
        nd = a.ndim
        return pl.BlockSpec(tuple(a.shape), lambda i, nd=nd: (0,) * nd)

    b = x.shape[0]
    n = w3.shape[1]
    return pl.pallas_call(
        _mlp_kernel,
        out_shape=jax.ShapeDtypeStruct((b, n), jnp.float32),
        grid=(1,),
        in_specs=[full(x), full(w1), full(b1), full(w2), full(b2),
                  full(w3), full(b3)],
        out_specs=pl.BlockSpec((b, n), lambda i: (0, 0)),
        compiler_params=pltpu.CompilerParams(
            dimension_semantics=("arbitrary",)),
    )(x, w1, b1, w2, b2, w3, b3)


# ---------------------------------------------------------------------------
# Glue (XLA-side): im2col arranged by 2x2-pool-window position, lane-padded
# ---------------------------------------------------------------------------
def _pool_window_patches(x_cbhw, kh, kw):
    """x_cbhw: (C, B, H, W).  Returns patches (4, C*kh*kw, B*Ho*Wo) for a valid
    (kh,kw)/stride-1 conv whose output is then 2x2/2 max-pooled.  Leading axis
    enumerates the position (py,px) inside each pool window; K rows in
    (ic, dy, dx) order (PyTorch (OC,IC,KH,KW) flatten); columns (b, ho, wo)."""
    c, b, h, w = x_cbhw.shape
    oh, ow = h - kh + 1, w - kw + 1
    assert oh % 2 == 0 and ow % 2 == 0, "pooling needs even conv output dims"
    ho, wo = oh // 2, ow // 2
    taps = [x_cbhw[:, :, dy:dy + oh, dx:dx + ow]
            for dy in range(kh) for dx in range(kw)]        # each (C,B,OH,OW)
    t = jnp.stack(taps, axis=1)                             # (C, kh*kw, B, OH, OW)
    k = c * kh * kw
    t = t.reshape(k, b, ho, 2, wo, 2)                       # oh = 2*ho+py, ow = 2*wo+px
    t = t.transpose(3, 5, 0, 1, 2, 4)                       # (2, 2, K, B, Ho, Wo)
    return t.reshape(4, k, b * ho * wo), ho, wo


def _pad_lanes(p, m_pad):
    m = p.shape[-1]
    if m_pad == m:
        return p
    return jnp.pad(p, ((0, 0), (0, 0), (0, m_pad - m)))


# ---------------------------------------------------------------------------
# Parameters (deterministic, PyTorch-default-style uniform init)
# ---------------------------------------------------------------------------
def init_params(key):
    def uni(k, shape, fan_in):
        bound = 1.0 / float(fan_in) ** 0.5
        return jax.random.uniform(k, shape, jnp.float32, -bound, bound)

    ks = jax.random.split(key, 10)
    return {
        "conv1_w": uni(ks[0], (6, 3, 5, 5), 3 * 5 * 5),
        "conv1_b": uni(ks[1], (6,), 3 * 5 * 5),
        "conv2_w": uni(ks[2], (16, 6, 5, 5), 6 * 5 * 5),
        "conv2_b": uni(ks[3], (16,), 6 * 5 * 5),
        "fc1_w": uni(ks[4], (16 * 5 * 5, 120), 16 * 5 * 5),
        "fc1_b": uni(ks[5], (120,), 16 * 5 * 5),
        "fc2_w": uni(ks[6], (120, 84), 120),
        "fc2_b": uni(ks[7], (84,), 120),
        "fc3_w": uni(ks[8], (84, 10), 84),
        "fc3_b": uni(ks[9], (10,), 84),
    }


# ---------------------------------------------------------------------------
# Forward pass (mirrors Net.forward)
# ---------------------------------------------------------------------------
def net_forward(params, x):
    b = x.shape[0]

    # conv1 + ReLU + pool : (B,3,32,32) -> (6, B*14*14), bf16
    x_c = jnp.transpose(x.astype(jnp.bfloat16), (1, 0, 2, 3))   # (3,B,32,32)
    p1, h1, w1s = _pool_window_patches(x_c, 5, 5)               # (4, 75, B*196)
    m1 = p1.shape[-1]
    tm1, m1_pad = _choose_m_tile(m1)
    a1 = conv_relu_pool(_pad_lanes(p1, m1_pad),
                        params["conv1_w"].reshape(6, -1).astype(jnp.bfloat16),
                        params["conv1_b"].reshape(6, 1),
                        m_tile=tm1)                             # (6, m1_pad) bf16

    # conv2 + ReLU + pool : (6,B,14,14) -> (16, B*5*5), bf16
    a1_img = a1[:, :m1].reshape(6, b, h1, w1s)
    p2, h2, w2s = _pool_window_patches(a1_img, 5, 5)            # (4, 150, B*25)
    m2 = p2.shape[-1]
    tm2, m2_pad = _choose_m_tile(m2)
    a2 = conv_relu_pool(_pad_lanes(p2, m2_pad),
                        params["conv2_w"].reshape(16, -1).astype(jnp.bfloat16),
                        params["conv2_b"].reshape(16, 1),
                        m_tile=tm2)                             # (16, m2_pad) bf16

    # flatten in PyTorch NCHW order: (B, 16*5*5), stays bf16
    z = (a2[:, :m2].reshape(16, b, h2 * w2s)
         .transpose(1, 0, 2).reshape(b, 16 * h2 * w2s))

    # fused fc1 -> fc2 -> fc3
    return mlp(z,
               params["fc1_w"].astype(jnp.bfloat16), params["fc1_b"].reshape(1, -1),
               params["fc2_w"].astype(jnp.bfloat16), params["fc2_b"].reshape(1, -1),
               params["fc3_w"].astype(jnp.bfloat16), params["fc3_b"].reshape(1, -1))


# ---------------------------------------------------------------------------
# Pure-JAX fp32 reference (pinned regression test for the pool/ReLU/bias
# commutation and the bf16 MXU path)
# ---------------------------------------------------------------------------
def net_forward_ref(params, x):
    def conv(x, w, b):
        y = jax.lax.conv_general_dilated(
            x, w, (1, 1), "VALID",
            dimension_numbers=("NCHW", "OIHW", "NCHW"))
        return jax.nn.relu(y + b[None, :, None, None])

    def pool(x):
        n, c, h, w = x.shape
        return x.reshape(n, c, h // 2, 2, w // 2, 2).max(axis=(3, 5))

    x = pool(conv(x, params["conv1_w"], params["conv1_b"]))
    x = pool(conv(x, params["conv2_w"], params["conv2_b"]))
    z = x.reshape(x.shape[0], -1)
    h = jax.nn.relu(z @ params["fc1_w"] + params["fc1_b"])
    h = jax.nn.relu(h @ params["fc2_w"] + params["fc2_b"])
    return h @ params["fc3_w"] + params["fc3_b"]


if __name__ == "__main__":
    key = jax.random.PRNGKey(0)
    k_params, k_x = jax.random.split(key)
    params = init_params(k_params)
    # Net's conv/fc sizes imply 3x32x32 (CIFAR-like) inputs; batch 8 fills the
    # 8 sublanes of the FC GEMMs while staying small.
    B = 8
    x = jax.random.normal(k_x, (B, 3, 32, 32), dtype=jnp.float32)

    fwd = jax.jit(net_forward)
    out = jax.block_until_ready(fwd(params, x))
    assert out.shape == (B, 10), out.shape
    assert out.dtype == jnp.float32

    ref = jax.block_until_ready(jax.jit(net_forward_ref)(params, x))
    max_err = float(jnp.max(jnp.abs(out - ref)))
    # bf16 MXU inputs with fp32 accumulation -> ~1e-2-level error budget.
    assert max_err < 5e-2, f"max |pallas - ref| = {max_err}"

    print("KERNEL_OK")
</pallas_src>

<mosaic_0001>
module attributes {stable_mosaic.version = 11 : i64} {
  func.func @_conv_relu_pool_kernel(%arg0: i32, %arg1: memref<4x75x1024xbf16, #tpu.memory_space<vmem>>, %arg2: memref<6x75xbf16, #tpu.memory_space<vmem>>, %arg3: memref<6x1xf32, #tpu.memory_space<vmem>>, %arg4: memref<6x1024xbf16, #tpu.memory_space<vmem>>) attributes {dimension_semantics = [#tpu.dimension_semantics<parallel>], iteration_bounds = array<i64: 2>, scalar_prefetch = 0 : i64, scratch_operands = 0 : i64, tpu.core_type = #tpu.core_type<tc>, window_params = [{transform_indices = @transform_0, window_bounds = array<i64: 4, 75, 1024>}, {pipeline_mode = #tpu.pipeline_mode<synchronous>, transform_indices = @transform_1, window_bounds = array<i64: 6, 75>}, {pipeline_mode = #tpu.pipeline_mode<synchronous>, transform_indices = @transform_2, window_bounds = array<i64: 6, 1>}, {transform_indices = @transform_3, window_bounds = array<i64: 6, 1024>}]} {
    %c0 = arith.constant 0 : index
    %c0_0 = arith.constant 0 : index
    %0 = vector.load %arg2[%c0, %c0_0] : memref<6x75xbf16, #tpu.memory_space<vmem>>, vector<6x75xbf16>
    %c0_1 = arith.constant 0 : index
    %c0_2 = arith.constant 0 : index
    %c0_3 = arith.constant 0 : index
    %1 = vector.load %arg1[%c0_1, %c0_2, %c0_3] : memref<4x75x1024xbf16, #tpu.memory_space<vmem>>, vector<1x75x1024xbf16>
    %2 = vector.shape_cast %1 : vector<1x75x1024xbf16> to vector<75x1024xbf16>
    %cst = arith.constant dense<0.000000e+00> : vector<6x1024xf32>
    %3 = tpu.matmul %0, %2, %cst {dimension_numbers = #tpu.dot_dimension_numbers<[1], [0], [0], [1], [0, 0, 1, 1], [], []>} : vector<6x75xbf16>, vector<75x1024xbf16>, vector<6x1024xf32> -> vector<6x1024xf32>
    %c1 = arith.constant 1 : index
    %c0_4 = arith.constant 0 : index
    %c0_5 = arith.constant 0 : index
    %4 = vector.load %arg1[%c1, %c0_4, %c0_5] : memref<4x75x1024xbf16, #tpu.memory_space<vmem>>, vector<1x75x1024xbf16>
    %5 = vector.shape_cast %4 : vector<1x75x1024xbf16> to vector<75x1024xbf16>
    %cst_6 = arith.constant dense<0.000000e+00> : vector<6x1024xf32>
    %6 = tpu.matmul %0, %5, %cst_6 {dimension_numbers = #tpu.dot_dimension_numbers<[1], [0], [0], [1], [0, 0, 1, 1], [], []>} : vector<6x75xbf16>, vector<75x1024xbf16>, vector<6x1024xf32> -> vector<6x1024xf32>
    %7 = arith.maximumf %3, %6 : vector<6x1024xf32>
    %c2 = arith.constant 2 : index
    %c0_7 = arith.constant 0 : index
    %c0_8 = arith.constant 0 : index
    %8 = vector.load %arg1[%c2, %c0_7, %c0_8] : memref<4x75x1024xbf16, #tpu.memory_space<vmem>>, vector<1x75x1024xbf16>
    %9 = vector.shape_cast %8 : vector<1x75x1024xbf16> to vector<75x1024xbf16>
    %cst_9 = arith.constant dense<0.000000e+00> : vector<6x1024xf32>
    %10 = tpu.matmul %0, %9, %cst_9 {dimension_numbers = #tpu.dot_dimension_numbers<[1], [0], [0], [1], [0, 0, 1, 1], [], []>} : vector<6x75xbf16>, vector<75x1024xbf16>, vector<6x1024xf32> -> vector<6x1024xf32>
    %11 = arith.maximumf %7, %10 : vector<6x1024xf32>
    %c3 = arith.constant 3 : index
    %c0_10 = arith.constant 0 : index
    %c0_11 = arith.constant 0 : index
    %12 = vector.load %arg1[%c3, %c0_10, %c0_11] : memref<4x75x1024xbf16, #tpu.memory_space<vmem>>, vector<1x75x1024xbf16>
    %13 = vector.shape_cast %12 : vector<1x75x1024xbf16> to vector<75x1024xbf16>
    %cst_12 = arith.constant dense<0.000000e+00> : vector<6x1024xf32>
    %14 = tpu.matmul %0, %13, %cst_12 {dimension_numbers = #tpu.dot_dimension_numbers<[1], [0], [0], [1], [0, 0, 1, 1], [], []>} : vector<6x75xbf16>, vector<75x1024xbf16>, vector<6x1024xf32> -> vector<6x1024xf32>
    %15 = arith.maximumf %11, %14 : vector<6x1024xf32>
    %c0_13 = arith.constant 0 : index
    %c0_14 = arith.constant 0 : index
    %16 = vector.load %arg3[%c0_13, %c0_14] : memref<6x1xf32, #tpu.memory_space<vmem>>, vector<6x1xf32>
    %17 = vector.broadcast %16 : vector<6x1xf32> to vector<6x1024xf32>
    %18 = arith.addf %15, %17 : vector<6x1024xf32>
    %cst_15 = arith.constant 0.000000e+00 : f32
    %19 = vector.broadcast %cst_15 : f32 to vector<6x1024xf32>
    %20 = arith.maximumf %18, %19 : vector<6x1024xf32>
    %21 = arith.truncf %20 : vector<6x1024xf32> to vector<6x1024xbf16>
    %c0_16 = arith.constant 0 : index
    %c0_17 = arith.constant 0 : index
    %22 = vector.load %arg4[%c0_16, %c0_17] : memref<6x1024xbf16, #tpu.memory_space<vmem>>, vector<6x1024xbf16>
    tpu.vector_store %arg4[%c0_16, %c0_17], %21 {strides = array<i32>} : memref<6x1024xbf16, #tpu.memory_space<vmem>>, vector<6x1024xbf16>,
    return
  }
  func.func @transform_0(%arg0: i32) -> (i32, i32, i32) {
    %c0_i32 = arith.constant 0 : i32
    %c0_i32_0 = arith.constant 0 : i32
    %c0_i32_1 = arith.constant 0 : i32
    return %c0_i32, %c0_i32_0, %arg0 : i32, i32, i32
  }
  func.func @transform_1(%arg0: i32) -> (i32, i32) {
    %c0_i32 = arith.constant 0 : i32
    %c0_i32_0 = arith.constant 0 : i32
    %c0_i32_1 = arith.constant 0 : i32
    return %c0_i32, %c0_i32_0 : i32, i32
  }
  func.func @transform_2(%arg0: i32) -> (i32, i32) {
    %c0_i32 = arith.constant 0 : i32
    %c0_i32_0 = arith.constant 0 : i32
    %c0_i32_1 = arith.constant 0 : i32
    return %c0_i32, %c0_i32_0 : i32, i32
  }
  func.func @transform_3(%arg0: i32) -> (i32, i32) {
    %c0_i32 = arith.constant 0 : i32
    %c0_i32_0 = arith.constant 0 : i32
    return %c0_i32, %arg0 : i32, i32
  }
}

module attributes {stable_mosaic.version = 11 : i64} {
  func.func @_conv_relu_pool_kernel(%arg0: i32, %arg1: memref<4x150x256xbf16, #tpu.memory_space<vmem>>, %arg2: memref<16x150xbf16, #tpu.memory_space<vmem>>, %arg3: memref<16x1xf32, #tpu.memory_space<vmem>>, %arg4: memref<16x256xbf16, #tpu.memory_space<vmem>>) attributes {dimension_semantics = [#tpu.dimension_semantics<parallel>], iteration_bounds = array<i64: 1>, scalar_prefetch = 0 : i64, scratch_operands = 0 : i64, tpu.core_type = #tpu.core_type<tc>, window_params = [{transform_indices = @transform_0, window_bounds = array<i64: 4, 150, 256>}, {pipeline_mode = #tpu.pipeline_mode<synchronous>, transform_indices = @transform_1, window_bounds = array<i64: 16, 150>}, {pipeline_mode = #tpu.pipeline_mode<synchronous>, transform_indices = @transform_2, window_bounds = array<i64: 16, 1>}, {transform_indices = @transform_3, window_bounds = array<i64: 16, 256>}]} {
    %c0 = arith.constant 0 : index
    %c0_0 = arith.constant 0 : index
    %0 = vector.load %arg2[%c0, %c0_0] : memref<16x150xbf16, #tpu.memory_space<vmem>>, vector<16x150xbf16>
    %c0_1 = arith.constant 0 : index
    %c0_2 = arith.constant 0 : index
    %c0_3 = arith.constant 0 : index
    %1 = vector.load %arg1[%c0_1, %c0_2, %c0_3] : memref<4x150x256xbf16, #tpu.memory_space<vmem>>, vector<1x150x256xbf16>
    %2 = vector.shape_cast %1 : vector<1x150x256xbf16> to vector<150x256xbf16>
    %cst = arith.constant dense<0.000000e+00> : vector<16x256xf32>
    %3 = tpu.matmul %0, %2, %cst {dimension_numbers = #tpu.dot_dimension_numbers<[1], [0], [0], [1], [0, 0, 1, 1], [], []>} : vector<16x150xbf16>, vector<150x256xbf16>, vector<16x256xf32> -> vector<16x256xf32>
    %c1 = arith.constant 1 : index
    %c0_4 = arith.constant 0 : index
    %c0_5 = arith.constant 0 : index
    %4 = vector.load %arg1[%c1, %c0_4, %c0_5] : memref<4x150x256xbf16, #tpu.memory_space<vmem>>, vector<1x150x256xbf16>
    %5 = vector.shape_cast %4 : vector<1x150x256xbf16> to vector<150x256xbf16>
    %cst_6 = arith.constant dense<0.000000e+00> : vector<16x256xf32>
    %6 = tpu.matmul %0, %5, %cst_6 {dimension_numbers = #tpu.dot_dimension_numbers<[1], [0], [0], [1], [0, 0, 1, 1], [], []>} : vector<16x150xbf16>, vector<150x256xbf16>, vector<16x256xf32> -> vector<16x256xf32>
    %7 = arith.maximumf %3, %6 : vector<16x256xf32>
    %c2 = arith.constant 2 : index
    %c0_7 = arith.constant 0 : index
    %c0_8 = arith.constant 0 : index
    %8 = vector.load %arg1[%c2, %c0_7, %c0_8] : memref<4x150x256xbf16, #tpu.memory_space<vmem>>, vector<1x150x256xbf16>
    %9 = vector.shape_cast %8 : vector<1x150x256xbf16> to vector<150x256xbf16>
    %cst_9 = arith.constant dense<0.000000e+00> : vector<16x256xf32>
    %10 = tpu.matmul %0, %9, %cst_9 {dimension_numbers = #tpu.dot_dimension_numbers<[1], [0], [0], [1], [0, 0, 1, 1], [], []>} : vector<16x150xbf16>, vector<150x256xbf16>, vector<16x256xf32> -> vector<16x256xf32>
    %11 = arith.maximumf %7, %10 : vector<16x256xf32>
    %c3 = arith.constant 3 : index
    %c0_10 = arith.constant 0 : index
    %c0_11 = arith.constant 0 : index
    %12 = vector.load %arg1[%c3, %c0_10, %c0_11] : memref<4x150x256xbf16, #tpu.memory_space<vmem>>, vector<1x150x256xbf16>
    %13 = vector.shape_cast %12 : vector<1x150x256xbf16> to vector<150x256xbf16>
    %cst_12 = arith.constant dense<0.000000e+00> : vector<16x256xf32>
    %14 = tpu.matmul %0, %13, %cst_12 {dimension_numbers = #tpu.dot_dimension_numbers<[1], [0], [0], [1], [0, 0, 1, 1], [], []>} : vector<16x150xbf16>, vector<150x256xbf16>, vector<16x256xf32> -> vector<16x256xf32>
    %15 = arith.maximumf %11, %14 : vector<16x256xf32>
    %c0_13 = arith.constant 0 : index
    %c0_14 = arith.constant 0 : index
    %16 = vector.load %arg3[%c0_13, %c0_14] : memref<16x1xf32, #tpu.memory_space<vmem>>, vector<16x1xf32>
    %17 = vector.broadcast %16 : vector<16x1xf32> to vector<16x256xf32>
    %18 = arith.addf %15, %17 : vector<16x256xf32>
    %cst_15 = arith.constant 0.000000e+00 : f32
    %19 = vector.broadcast %cst_15 : f32 to vector<16x256xf32>
    %20 = arith.maximumf %18, %19 : vector<16x256xf32>
    %21 = arith.truncf %20 : vector<16x256xf32> to vector<16x256xbf16>
    %c0_16 = arith.constant 0 : index
    %c0_17 = arith.constant 0 : index
    %22 = vector.load %arg4[%c0_16, %c0_17] : memref<16x256xbf16, #tpu.memory_space<vmem>>, vector<16x256xbf16>
    tpu.vector_store %arg4[%c0_16, %c0_17], %21 {strides = array<i32>} : memref<16x256xbf16, #tpu.memory_space<vmem>>, vector<16x256xbf16>,
    return
  }
  func.func @transform_0(%arg0: i32) -> (i32, i32, i32) {
    %c0_i32 = arith.constant 0 : i32
    %c0_i32_0 = arith.constant 0 : i32
    %c0_i32_1 = arith.constant 0 : i32
    return %c0_i32, %c0_i32_0, %arg0 : i32, i32, i32
  }
  func.func @transform_1(%arg0: i32) -> (i32, i32) {
    %c0_i32 = arith.constant 0 : i32
    %c0_i32_0 = arith.constant 0 : i32
    %c0_i32_1 = arith.constant 0 : i32
    return %c0_i32, %c0_i32_0 : i32, i32
  }
  func.func @transform_2(%arg0: i32) -> (i32, i32) {
    %c0_i32 = arith.constant 0 : i32
    %c0_i32_0 = arith.constant 0 : i32
    %c0_i32_1 = arith.constant 0 : i32
    return %c0_i32, %c0_i32_0 : i32, i32
  }
  func.func @transform_3(%arg0: i32) -> (i32, i32) {
    %c0_i32 = arith.constant 0 : i32
    %c0_i32_0 = arith.constant 0 : i32
    return %c0_i32, %arg0 : i32, i32
  }
}

module attributes {stable_mosaic.version = 11 : i64} {
  func.func @_mlp_kernel(%arg0: i32, %arg1: memref<8x400xbf16, #tpu.memory_space<vmem>>, %arg2: memref<400x120xbf16, #tpu.memory_space<vmem>>, %arg3: memref<1x120xf32, #tpu.memory_space<vmem>>, %arg4: memref<120x84xbf16, #tpu.memory_space<vmem>>, %arg5: memref<1x84xf32, #tpu.memory_space<vmem>>, %arg6: memref<84x10xbf16, #tpu.memory_space<vmem>>, %arg7: memref<1x10xf32, #tpu.memory_space<vmem>>, %arg8: memref<8x10xf32, #tpu.memory_space<vmem>>) attributes {dimension_semantics = [#tpu.dimension_semantics<arbitrary>], iteration_bounds = array<i64: 1>, scalar_prefetch = 0 : i64, scratch_operands = 0 : i64, tpu.core_type = #tpu.core_type<tc>, window_params = [{pipeline_mode = #tpu.pipeline_mode<synchronous>, transform_indices = @transform_0, window_bounds = array<i64: 8, 400>}, {pipeline_mode = #tpu.pipeline_mode<synchronous>, transform_indices = @transform_1, window_bounds = array<i64: 400, 120>}, {pipeline_mode = #tpu.pipeline_mode<synchronous>, transform_indices = @transform_2, window_bounds = array<i64: 1, 120>}, {pipeline_mode = #tpu.pipeline_mode<synchronous>, transform_indices = @transform_3, window_bounds = array<i64: 120, 84>}, {pipeline_mode = #tpu.pipeline_mode<synchronous>, transform_indices = @transform_4, window_bounds = array<i64: 1, 84>}, {pipeline_mode = #tpu.pipeline_mode<synchronous>, transform_indices = @transform_5, window_bounds = array<i64: 84, 10>}, {pipeline_mode = #tpu.pipeline_mode<synchronous>, transform_indices = @transform_6, window_bounds = array<i64: 1, 10>}, {pipeline_mode = #tpu.pipeline_mode<synchronous>, transform_indices = @transform_7, window_bounds = array<i64: 8, 10>}]} {
    %c0 = arith.constant 0 : index
    %c0_0 = arith.constant 0 : index
    %0 = vector.load %arg1[%c0, %c0_0] : memref<8x400xbf16, #tpu.memory_space<vmem>>, vector<8x400xbf16>
    %c0_1 = arith.constant 0 : index
    %c0_2 = arith.constant 0 : index
    %1 = vector.load %arg2[%c0_1, %c0_2] : memref<400x120xbf16, #tpu.memory_space<vmem>>, vector<400x120xbf16>
    %cst = arith.constant dense<0.000000e+00> : vector<8x120xf32>
    %2 = tpu.matmul %0, %1, %cst {dimension_numbers = #tpu.dot_dimension_numbers<[1], [0], [0], [1], [0, 0, 1, 1], [], []>} : vector<8x400xbf16>, vector<400x120xbf16>, vector<8x120xf32> -> vector<8x120xf32>
    %c0_3 = arith.constant 0 : index
    %c0_4 = arith.constant 0 : index
    %3 = vector.load %arg3[%c0_3, %c0_4] : memref<1x120xf32, #tpu.memory_space<vmem>>, vector<1x120xf32>
    %4 = vector.broadcast %3 : vector<1x120xf32> to vector<8x120xf32>
    %5 = arith.addf %2, %4 : vector<8x120xf32>
    %cst_5 = arith.constant 0.000000e+00 : f32
    %6 = vector.broadcast %cst_5 : f32 to vector<8x120xf32>
    %7 = arith.maximumf %5, %6 : vector<8x120xf32>
    %8 = arith.truncf %7 : vector<8x120xf32> to vector<8x120xbf16>
    %c0_6 = arith.constant 0 : index
    %c0_7 = arith.constant 0 : index
    %9 = vector.load %arg4[%c0_6, %c0_7] : memref<120x84xbf16, #tpu.memory_space<vmem>>, vector<120x84xbf16>
    %cst_8 = arith.constant dense<0.000000e+00> : vector<8x84xf32>
    %10 = tpu.matmul %8, %9, %cst_8 {dimension_numbers = #tpu.dot_dimension_numbers<[1], [0], [0], [1], [0, 0, 1, 1], [], []>} : vector<8x120xbf16>, vector<120x84xbf16>, vector<8x84xf32> -> vector<8x84xf32>
    %c0_9 = arith.constant 0 : index
    %c0_10 = arith.constant 0 : index
    %11 = vector.load %arg5[%c0_9, %c0_10] : memref<1x84xf32, #tpu.memory_space<vmem>>, vector<1x84xf32>
    %12 = vector.broadcast %11 : vector<1x84xf32> to vector<8x84xf32>
    %13 = arith.addf %10, %12 : vector<8x84xf32>
    %cst_11 = arith.constant 0.000000e+00 : f32
    %14 = vector.broadcast %cst_11 : f32 to vector<8x84xf32>
    %15 = arith.maximumf %13, %14 : vector<8x84xf32>
    %16 = arith.truncf %15 : vector<8x84xf32> to vector<8x84xbf16>
    %c0_12 = arith.constant 0 : index
    %c0_13 = arith.constant 0 : index
    %17 = vector.load %arg6[%c0_12, %c0_13] : memref<84x10xbf16, #tpu.memory_space<vmem>>, vector<84x10xbf16>
    %cst_14 = arith.constant dense<0.000000e+00> : vector<8x10xf32>
    %18 = tpu.matmul %16, %17, %cst_14 {dimension_numbers = #tpu.dot_dimension_numbers<[1], [0], [0], [1], [0, 0, 1, 1], [], []>} : vector<8x84xbf16>, vector<84x10xbf16>, vector<8x10xf32> -> vector<8x10xf32>
    %c0_15 = arith.constant 0 : index
    %c0_16 = arith.constant 0 : index
    %19 = vector.load %arg7[%c0_15, %c0_16] : memref<1x10xf32, #tpu.memory_space<vmem>>, vector<1x10xf32>
    %20 = vector.broadcast %19 : vector<1x10xf32> to vector<8x10xf32>
    %21 = arith.addf %18, %20 : vector<8x10xf32>
    %c0_17 = arith.constant 0 : index
    %c0_18 = arith.constant 0 : index
    %22 = vector.load %arg8[%c0_17, %c0_18] : memref<8x10xf32, #tpu.memory_space<vmem>>, vector<8x10xf32>
    tpu.vector_store %arg8[%c0_17, %c0_18], %21 {strides = array<i32>} : memref<8x10xf32, #tpu.memory_space<vmem>>, vector<8x10xf32>,
    return
  }
  func.func @transform_0(%arg0: i32) -> (i32, i32) {
    %c0_i32 = arith.constant 0 : i32
    %c0_i32_0 = arith.constant 0 : i32
    %c0_i32_1 = arith.constant 0 : i32
    return %c0_i32, %c0_i32_0 : i32, i32
  }
  func.func @transform_1(%arg0: i32) -> (i32, i32) {
    %c0_i32 = arith.constant 0 : i32
    %c0_i32_0 = arith.constant 0 : i32
    %c0_i32_1 = arith.constant 0 : i32
    return %c0_i32, %c0_i32_0 : i32, i32
  }
  func.func @transform_2(%arg0: i32) -> (i32, i32) {
    %c0_i32 = arith.constant 0 : i32
    %c0_i32_0 = arith.constant 0 : i32
    %c0_i32_1 = arith.constant 0 : i32
    return %c0_i32, %c0_i32_0 : i32, i32
  }
  func.func @transform_3(%arg0: i32) -> (i32, i32) {
    %c0_i32 = arith.constant 0 : i32
    %c0_i32_0 = arith.constant 0 : i32
    %c0_i32_1 = arith.constant 0 : i32
    return %c0_i32, %c0_i32_0 : i32, i32
  }
  func.func @transform_4(%arg0: i32) -> (i32, i32) {
    %c0_i32 = arith.constant 0 : i32
    %c0_i32_0 = arith.constant 0 : i32
    %c0_i32_1 = arith.constant 0 : i32
    return %c0_i32, %c0_i32_0 : i32, i32
  }
  func.func @transform_5(%arg0: i32) -> (i32, i32) {
    %c0_i32 = arith.constant 0 : i32
    %c0_i32_0 = arith.constant 0 : i32
    %c0_i32_1 = arith.constant 0 : i32
    return %c0_i32, %c0_i32_0 : i32, i32
  }
  func.func @transform_6(%arg0: i32) -> (i32, i32) {
    %c0_i32 = arith.constant 0 : i32
    %c0_i32_0 = arith.constant 0 : i32
    %c0_i32_1 = arith.constant 0 : i32
    return %c0_i32, %c0_i32_0 : i32, i32
  }
  func.func @transform_7(%arg0: i32) -> (i32, i32) {
    %c0_i32 = arith.constant 0 : i32
    %c0_i32_0 = arith.constant 0 : i32
    %c0_i32_1 = arith.constant 0 : i32
    return %c0_i32, %c0_i32_0 : i32, i32
  }
}

</mosaic_0001>

<bundles_post_ra>
// kernel: net_forward.3
= control target key start
LH: loop header
LB: loop body
LE: loop exit
PB: predicated region body
PF: predicated region fallthrough
CT: control target
= control target key end

     0   :  { %s2739_s12 = smov 0   ;;  %s2741_s13 = smov 0   ;;  %s3443_s0 = inlined_call_operand.vmem [shape: bf16[4,75,2048], index: 0, kind: input, shape index: {}]   ;;  %s3444_s1 = inlined_call_operand.vmem [shape: bf16[6,75], index: 1, kind: input, shape index: {}]   ;;  %s3445_s2 = inlined_call_operand.vmem [shape: f32[6,1], index: 2, kind: input, shape index: {}]   ;;  %s3446_s3 = inlined_call_operand.vmem [shape: bf16[6,2048], index: 3, kind: output, shape index: {}]  }
   0x1   :  { %s2743_s14 = smov 0  }
   0x2 LB: > { %s2348_s15 = sadd.s32 4294967295, %s2715_s14   ;;  %s2756_s16 = sadd.s32 1, %s2715_s14   ;;  %s2715_s14 = sphi %s2743_s14, %s3449_s14   ;;  %s2711_s13 = sphi %s2741_s13, %s3448_s13   ;;  %s2707_s12 = sphi %s2739_s12, %s3447_s12  }
   0x3   : > { %s17_s17 = ssub.s32 %s2715_s14, %s2756_s16  ;;  %s20_s18 = sadd.s32 1, %s2711_s13 }
   0x4   : > { %p18_p0 = scmp.eq.s32.totalorder %s17_s17, 0  ;;  %p27_p1 = scmp.ne.s32.totalorder %s2711_s13, %s2707_s12 }
   0x5   : > { %p28_p2 = scmp.eq.s32.totalorder %s2715_s14, 0  ;;  %p2351_p4 = scmp.ge.s32.totalorder %s2715_s14, 2 }
   0x6   : > { %s2765_s19 = scalar_select %p18_p0, %s2711_s13, %s20_s18  }
   0x7   : > { %p29_p3 = por %p28_p2, %p27_p1  ;;  %127 = sbr.rel (%p2351_p4) target bundleno = 99 (0x63), region = 24 }
   0xe   : > { %130 = sbr.rel (!%p29_p3) target bundleno = 99 (0x63), region = 28  ;;  %s132_s20 = sand.u32 (%p29_p3), 1, %s2711_s13  }
   0xf   : > { %s2659_s21 = sshll.u32 (%p29_p3), %s2715_s14, 5  ;;  %s2664_s22 = smul.u32 (%p29_p3), 1280, %s132_s20 }
  0x10   : > { %s2773_s25 = scalar_lea.vmem (%p29_p3), %s3443_s0, %s2659_s21 }
  0x11   : > { %v150_v0 = vld [vmem:[%s2773_s25] sm:$0xff] (%p29_p3)  ;;  %v152_v1 = vld [vmem:[%s2773_s25 + $0x8] sm:$0xff] (%p29_p3)  ;;  %v154_v2 = vld [vmem:[%s2773_s25 + $0x10] sm:$0xff] (%p29_p3)  ;;  %s2781_s26 = scalar_lea.vmem (%p29_p3), [#allocation2], %s2664_s22 }
  0x12   : > { %v156_v3 = vld [vmem:[%s2773_s25 + $0x18] sm:$0xff] (%p29_p3)  ;;  %v158_v4 = vld [vmem:[%s2773_s25 + $0x40] sm:$0xff] (%p29_p3)  ;;  %v160_v5 = vld [vmem:[%s2773_s25 + $0x48] sm:$0xff] (%p29_p3)  ;;  %151 = vst [vmem:[%s2781_s26] sm:$0xff] (%p29_p3), %v150_v0 }
  0x13   : > { %153 = vst [vmem:[%s2781_s26 + $0x8] sm:$0xff] (%p29_p3), %v152_v1  ;;  %155 = vst [vmem:[%s2781_s26 + $0x10] sm:$0xff] (%p29_p3), %v154_v2  ;;  %v162_v6 = vld [vmem:[%s2773_s25 + $0x50] sm:$0xff] (%p29_p3)  ;;  %v164_v7 = vld [vmem:[%s2773_s25 + $0x58] sm:$0xff] (%p29_p3) }
  0x14   : > { %157 = vst [vmem:[%s2781_s26 + $0x18] sm:$0xff] (%p29_p3), %v156_v3  ;;  %159 = vst [vmem:[%s2781_s26 + $0x20] sm:$0xff] (%p29_p3), %v158_v4  ;;  %v166_v8 = vld [vmem:[%s2773_s25 + $0x80] sm:$0xff] (%p29_p3)  ;;  %v168_v9 = vld [vmem:[%s2773_s25 + $0x88] sm:$0xff] (%p29_p3) }
  0x15   : > { %161 = vst [vmem:[%s2781_s26 + $0x28] sm:$0xff] %v160_v5  ;;  %163 = vst [vmem:[%s2781_s26 + $0x30] sm:$0xff] %v162_v6  ;;  %v170_v10 = vld [vmem:[%s2773_s25 + $0x90] sm:$0xff]  ;;  %v172_v11 = vld [vmem:[%s2773_s25 + $0x98] sm:$0xff] }
  0x16   : > { %165 = vst [vmem:[%s2781_s26 + $0x38] sm:$0xff] %v164_v7  ;;  %167 = vst [vmem:[%s2781_s26 + $0x40] sm:$0xff] %v166_v8  ;;  %v174_v12 = vld [vmem:[%s2773_s25 + $0xc0] sm:$0xff]  ;;  %v176_v13 = vld [vmem:[%s2773_s25 + $0xc8] sm:$0xff] }
  0x17   : > { %169 = vst [vmem:[%s2781_s26 + $0x48] sm:$0xff] %v168_v9  ;;  %171 = vst [vmem:[%s2781_s26 + $0x50] sm:$0xff] %v170_v10  ;;  %v178_v14 = vld [vmem:[%s2773_s25 + $0xd0] sm:$0xff]  ;;  %v180_v15 = vld [vmem:[%s2773_s25 + $0xd8] sm:$0xff] }
  0x18   : > { %173 = vst [vmem:[%s2781_s26 + $0x58] sm:$0xff] %v172_v11  ;;  %175 = vst [vmem:[%s2781_s26 + $0x60] sm:$0xff] %v174_v12  ;;  %v182_v16 = vld [vmem:[%s2773_s25 + $0x100] sm:$0xff]  ;;  %v184_v17 = vld [vmem:[%s2773_s25 + $0x108] sm:$0xff] }
  0x19   : > { %177 = vst [vmem:[%s2781_s26 + $0x68] sm:$0xff] %v176_v13  ;;  %179 = vst [vmem:[%s2781_s26 + $0x70] sm:$0xff] %v178_v14  ;;  %v186_v18 = vld [vmem:[%s2773_s25 + $0x110] sm:$0xff]  ;;  %v188_v19 = vld [vmem:[%s2773_s25 + $0x118] sm:$0xff] }
  0x1a   : > { %181 = vst [vmem:[%s2781_s26 + $0x78] sm:$0xff] %v180_v15  ;;  %183 = vst [vmem:[%s2781_s26 + $0x80] sm:$0xff] %v182_v16  ;;  %v190_v20 = vld [vmem:[%s2773_s25 + $0x140] sm:$0xff]  ;;  %v192_v21 = vld [vmem:[%s2773_s25 + $0x148] sm:$0xff] }
  0x1b   : > { %185 = vst [vmem:[%s2781_s26 + $0x88] sm:$0xff] %v184_v17  ;;  %187 = vst [vmem:[%s2781_s26 + $0x90] sm:$0xff] %v186_v18  ;;  %v194_v22 = vld [vmem:[%s2773_s25 + $0x150] sm:$0xff]  ;;  %v196_v23 = vld [vmem:[%s2773_s25 + $0x158] sm:$0xff] }
  0x1c   : > { %189 = vst [vmem:[%s2781_s26 + $0x98] sm:$0xff] %v188_v19  ;;  %191 = vst [vmem:[%s2781_s26 + $0xa0] sm:$0xff] %v190_v20  ;;  %v198_v24 = vld [vmem:[%s2773_s25 + $0x180] sm:$0xff]  ;;  %v200_v25 = vld [vmem:[%s2773_s25 + $0x188] sm:$0xff] }
  0x1d   : > { %193 = vst [vmem:[%s2781_s26 + $0xa8] sm:$0xff] %v192_v21  ;;  %195 = vst [vmem:[%s2781_s26 + $0xb0] sm:$0xff] %v194_v22  ;;  %v202_v26 = vld [vmem:[%s2773_s25 + $0x190] sm:$0xff]  ;;  %v204_v27 = vld [vmem:[%s2773_s25 + $0x198] sm:$0xff] }
  0x1e   : > { %197 = vst [vmem:[%s2781_s26 + $0xb8] sm:$0xff] %v196_v23  ;;  %199 = vst [vmem:[%s2781_s26 + $0xc0] sm:$0xff] %v198_v24  ;;  %v206_v28 = vld [vmem:[%s2773_s25 + $0x1c0] sm:$0xff]  ;;  %v208_v29 = vld [vmem:[%s2773_s25 + $0x1c8] sm:$0xff] }
  0x1f   : > { %201 = vst [vmem:[%s2781_s26 + $0xc8] sm:$0xff] %v200_v25  ;;  %203 = vst [vmem:[%s2781_s26 + $0xd0] sm:$0xff] %v202_v26  ;;  %v210_v30 = vld [vmem:[%s2773_s25 + $0x1d0] sm:$0xff]  ;;  %v212_v31 = vld [vmem:[%s2773_s25 + $0x1d8] sm:$0xff] }
  0x20   : > { %205 = vst [vmem:[%s2781_s26 + $0xd8] sm:$0xff] %v204_v27  ;;  %207 = vst [vmem:[%s2781_s26 + $0xe0] sm:$0xff] %v206_v28  ;;  %v214_v32 = vld [vmem:[%s2773_s25 + $0x200] sm:$0xff]  ;;  %v216_v33 = vld [vmem:[%s2773_s25 + $0x208] sm:$0xff] }
  0x21   : > { %209 = vst [vmem:[%s2781_s26 + $0xe8] sm:$0xff] %v208_v29  ;;  %211 = vst [vmem:[%s2781_s26 + $0xf0] sm:$0xff] %v210_v30  ;;  %v218_v34 = vld [vmem:[%s2773_s25 + $0x210] sm:$0xff]  ;;  %v220_v35 = vld [vmem:[%s2773_s25 + $0x218] sm:$0xff] }
  0x22   : > { %213 = vst [vmem:[%s2781_s26 + $0xf8] sm:$0xff] %v212_v31  ;;  %215 = vst [vmem:[%s2781_s26 + $0x100] sm:$0xff] %v214_v32  ;;  %v222_v36 = vld [vmem:[%s2773_s25 + $0x240] sm:$0xff]  ;;  %v224_v37 = vld [vmem:[%s2773_s25 + $0x248] sm:$0xff] }
  0x23   : > { %217 = vst [vmem:[%s2781_s26 + $0x108] sm:$0xff] %v216_v33  ;;  %219 = vst [vmem:[%s2781_s26 + $0x110] sm:$0xff] %v218_v34  ;;  %v226_v38 = vld [vmem:[%s2773_s25 + $0x250] sm:$0xff]  ;;  %v228_v39 = vld [vmem:[%s2773_s25 + $0x258] sm:$0xff] }
  0x24   : > { %221 = vst [vmem:[%s2781_s26 + $0x118] sm:$0xff] %v220_v35  ;;  %223 = vst [vmem:[%s2781_s26 + $0x120] sm:$0xff] %v222_v36  ;;  %v230_v40 = vld [vmem:[%s2773_s25 + $0x280] sm:$0xff]  ;;  %v232_v41 = vld [vmem:[%s2773_s25 + $0x288] sm:$0xff] }
  0x25   : > { %225 = vst [vmem:[%s2781_s26 + $0x128] sm:$0xff] %v224_v37  ;;  %227 = vst [vmem:[%s2781_s26 + $0x130] sm:$0xff] %v226_v38  ;;  %v234_v42 = vld [vmem:[%s2773_s25 + $0x290] sm:$0xff]  ;;  %v236_v43 = vld [vmem:[%s2773_s25 + $0x298] sm:$0xff] }
  0x26   : > { %229 = vst [vmem:[%s2781_s26 + $0x138] sm:$0xff] %v228_v39  ;;  %231 = vst [vmem:[%s2781_s26 + $0x140] sm:$0xff] %v230_v40  ;;  %v238_v44 = vld [vmem:[%s2773_s25 + $0x2c0] sm:$0xff]  ;;  %v240_v45 = vld [vmem:[%s2773_s25 + $0x2c8] sm:$0xff] }
  0x27   : > { %233 = vst [vmem:[%s2781_s26 + $0x148] sm:$0xff] %v232_v41  ;;  %235 = vst [vmem:[%s2781_s26 + $0x150] sm:$0xff] %v234_v42  ;;  %v242_v46 = vld [vmem:[%s2773_s25 + $0x2d0] sm:$0xff]  ;;  %v244_v47 = vld [vmem:[%s2773_s25 + $0x2d8] sm:$0xff] }
  0x28   : > { %237 = vst [vmem:[%s2781_s26 + $0x158] sm:$0xff] %v236_v43  ;;  %239 = vst [vmem:[%s2781_s26 + $0x160] sm:$0xff] %v238_v44  ;;  %v246_v48 = vld [vmem:[%s2773_s25 + $0x300] sm:$0xff]  ;;  %v248_v49 = vld [vmem:[%s2773_s25 + $0x308] sm:$0xff] }
  0x29   : > { %241 = vst [vmem:[%s2781_s26 + $0x168] sm:$0xff] %v240_v45  ;;  %243 = vst [vmem:[%s2781_s26 + $0x170] sm:$0xff] %v242_v46  ;;  %v250_v50 = vld [vmem:[%s2773_s25 + $0x310] sm:$0xff]  ;;  %v252_v51 = vld [vmem:[%s2773_s25 + $0x318] sm:$0xff] }
  0x2a   : > { %245 = vst [vmem:[%s2781_s26 + $0x178] sm:$0xff] %v244_v47  ;;  %247 = vst [vmem:[%s2781_s26 + $0x180] sm:$0xff] %v246_v48  ;;  %v254_v52 = vld [vmem:[%s2773_s25 + $0x340] sm:$0xff]  ;;  %v256_v53 = vld [vmem:[%s2773_s25 + $0x348] sm:$0xff] }
  0x2b   : > { %249 = vst [vmem:[%s2781_s26 + $0x188] sm:$0xff] %v248_v49  ;;  %251 = vst [vmem:[%s2781_s26 + $0x190] sm:$0xff] %v250_v50  ;;  %v258_v54 = vld [vmem:[%s2773_s25 + $0x350] sm:$0xff]  ;;  %v260_v55 = vld [vmem:[%s2773_s25 + $0x358] sm:$0xff] }
  0x2c   : > { %253 = vst [vmem:[%s2781_s26 + $0x198] sm:$0xff] %v252_v51  ;;  %255 = vst [vmem:[%s2781_s26 + $0x1a0] sm:$0xff] %v254_v52  ;;  %v262_v56 = vld [vmem:[%s2773_s25 + $0x380] sm:$0xff]  ;;  %v264_v57 = vld [vmem:[%s2773_s25 + $0x388] sm:$0xff] }
  0x2d   : > { %257 = vst [vmem:[%s2781_s26 + $0x1a8] sm:$0xff] %v256_v53  ;;  %259 = vst [vmem:[%s2781_s26 + $0x1b0] sm:$0xff] %v258_v54  ;;  %v266_v58 = vld [vmem:[%s2773_s25 + $0x390] sm:$0xff]  ;;  %v268_v59 = vld [vmem:[%s2773_s25 + $0x398] sm:$0xff] }
  0x2e   : > { %261 = vst [vmem:[%s2781_s26 + $0x1b8] sm:$0xff] %v260_v55  ;;  %263 = vst [vmem:[%s2781_s26 + $0x1c0] sm:$0xff] %v262_v56  ;;  %v270_v60 = vld [vmem:[%s2773_s25 + $0x3c0] sm:$0xff]  ;;  %v272_v61 = vld [vmem:[%s2773_s25 + $0x3c8] sm:$0xff] }
  0x2f   : > { %265 = vst [vmem:[%s2781_s26 + $0x1c8] sm:$0xff] %v264_v57  ;;  %267 = vst [vmem:[%s2781_s26 + $0x1d0] sm:$0xff] %v266_v58  ;;  %v274_v62 = vld [vmem:[%s2773_s25 + $0x3d0] sm:$0xff]  ;;  %v276_v63 = vld [vmem:[%s2773_s25 + $0x3d8] sm:$0xff] }
  0x30   : > { %269 = vst [vmem:[%s2781_s26 + $0x1d8] sm:$0xff] %v268_v59  ;;  %271 = vst [vmem:[%s2781_s26 + $0x1e0] sm:$0xff] %v270_v60  ;;  %v278_v0 = vld [vmem:[%s2773_s25 + $0x400] sm:$0xff]  ;;  %v280_v1 = vld [vmem:[%s2773_s25 + $0x408] sm:$0xff] }
  0x31   : > { %273 = vst [vmem:[%s2781_s26 + $0x1e8] sm:$0xff] %v272_v61  ;;  %275 = vst [vmem:[%s2781_s26 + $0x1f0] sm:$0xff] %v274_v62  ;;  %v282_v2 = vld [vmem:[%s2773_s25 + $0x410] sm:$0xff]  ;;  %v284_v3 = vld [vmem:[%s2773_s25 + $0x418] sm:$0xff] }
  0x32   : > { %277 = vst [vmem:[%s2781_s26 + $0x1f8] sm:$0xff] %v276_v63  ;;  %279 = vst [vmem:[%s2781_s26 + $0x200] sm:$0xff] %v278_v0  ;;  %v286_v4 = vld [vmem:[%s2773_s25 + $0x440] sm:$0xff]  ;;  %v288_v5 = vld [vmem:[%s2773_s25 + $0x448] sm:$0xff] }
  0x33   : > { %281 = vst [vmem:[%s2781_s26 + $0x208] sm:$0xff] %v280_v1  ;;  %283 = vst [vmem:[%s2781_s26 + $0x210] sm:$0xff] %v282_v2  ;;  %v290_v6 = vld [vmem:[%s2773_s25 + $0x450] sm:$0xff]  ;;  %v292_v7 = vld [vmem:[%s2773_s25 + $0x458] sm:$0xff] }
  0x34   : > { %285 = vst [vmem:[%s2781_s26 + $0x218] sm:$0xff] %v284_v3  ;;  %287 = vst [vmem:[%s2781_s26 + $0x220] sm:$0xff] %v286_v4  ;;  %v294_v8 = vld [vmem:[%s2773_s25 + $0x480] sm:$0xff]  ;;  %v296_v9 = vld [vmem:[%s2773_s25 + $0x488] sm:$0xff] }
  0x35   : > { %289 = vst [vmem:[%s2781_s26 + $0x228] sm:$0xff] %v288_v5  ;;  %291 = vst [vmem:[%s2781_s26 + $0x230] sm:$0xff] %v290_v6  ;;  %v298_v10 = vld [vmem:[%s2773_s25 + $0x490] sm:$0xff]  ;;  %v300_v11 = vld [vmem:[%s2773_s25 + $0x498] sm:$0xff] }
  0x36   : > { %293 = vst [vmem:[%s2781_s26 + $0x238] sm:$0xff] %v292_v7  ;;  %295 = vst [vmem:[%s2781_s26 + $0x240] sm:$0xff] %v294_v8  ;;  %v302_v12 = vld [vmem:[%s2773_s25 + $0x4c0] sm:$0xff]  ;;  %v304_v13 = vld [vmem:[%s2773_s25 + $0x4c8] sm:$0xff] }
  0x37   : > { %297 = vst [vmem:[%s2781_s26 + $0x248] sm:$0xff] %v296_v9  ;;  %299 = vst [vmem:[%s2781_s26 + $0x250] sm:$0xff] %v298_v10  ;;  %v306_v14 = vld [vmem:[%s2773_s25 + $0x4d0] sm:$0xff]  ;;  %v308_v15 = vld [vmem:[%s2773_s25 + $0x4d8] sm:$0xff] }
  0x38   : > { %301 = vst [vmem:[%s2781_s26 + $0x258] sm:$0xff] %v300_v11  ;;  %303 = vst [vmem:[%s2781_s26 + $0x260] sm:$0xff] %v302_v12  ;;  %v310_v16 = vld [vmem:[%s2773_s25 + $0x500] sm:$0xff]  ;;  %v312_v17 = vld [vmem:[%s2773_s25 + $0x508] sm:$0xff] }
  0x39   : > { %305 = vst [vmem:[%s2781_s26 + $0x268] sm:$0xff] %v304_v13  ;;  %307 = vst [vmem:[%s2781_s26 + $0x270] sm:$0xff] %v306_v14  ;;  %v314_v18 = vld [vmem:[%s2773_s25 + $0x510] sm:$0xff]  ;;  %v316_v19 = vld [vmem:[%s2773_s25 + $0x518] sm:$0xff] }
  0x3a   : > { %309 = vst [vmem:[%s2781_s26 + $0x278] sm:$0xff] %v308_v15  ;;  %311 = vst [vmem:[%s2781_s26 + $0x280] sm:$0xff] %v310_v16  ;;  %v318_v20 = vld [vmem:[%s2773_s25 + $0x540] sm:$0xff]  ;;  %v320_v21 = vld [vmem:[%s2773_s25 + $0x548] sm:$0xff] }
  0x3b   : > { %313 = vst [vmem:[%s2781_s26 + $0x288] sm:$0xff] %v312_v17  ;;  %315 = vst [vmem:[%s2781_s26 + $0x290] sm:$0xff] %v314_v18  ;;  %v322_v22 = vld [vmem:[%s2773_s25 + $0x550] sm:$0xff]  ;;  %v324_v23 = vld [vmem:[%s2773_s25 + $0x558] sm:$0xff] }
  0x3c   : > { %317 = vst [vmem:[%s2781_s26 + $0x298] sm:$0xff] %v316_v19  ;;  %319 = vst [vmem:[%s2781_s26 + $0x2a0] sm:$0xff] %v318_v20  ;;  %v326_v24 = vld [vmem:[%s2773_s25 + $0x580] sm:$0xff]  ;;  %v328_v25 = vld [vmem:[%s2773_s25 + $0x588] sm:$0xff] }
  0x3d   : > { %321 = vst [vmem:[%s2781_s26 + $0x2a8] sm:$0xff] %v320_v21  ;;  %323 = vst [vmem:[%s2781_s26 + $0x2b0] sm:$0xff] %v322_v22  ;;  %v330_v26 = vld [vmem:[%s2773_s25 + $0x590] sm:$0xff]  ;;  %v332_v27 = vld [vmem:[%s2773_s25 + $0x598] sm:$0xff] }
  0x3e   : > { %325 = vst [vmem:[%s2781_s26 + $0x2b8] sm:$0xff] %v324_v23  ;;  %327 = vst [vmem:[%s2781_s26 + $0x2c0] sm:$0xff] %v326_v24  ;;  %v334_v28 = vld [vmem:[%s2773_s25 + $0x5c0] sm:$0xff]  ;;  %v336_v29 = vld [vmem:[%s2773_s25 + $0x5c8] sm:$0xff] }
  0x3f   : > { %329 = vst [vmem:[%s2781_s26 + $0x2c8] sm:$0xff] %v328_v25  ;;  %331 = vst [vmem:[%s2781_s26 + $0x2d0] sm:$0xff] %v330_v26  ;;  %v338_v30 = vld [vmem:[%s2773_s25 + $0x5d0] sm:$0xff]  ;;  %v340_v31 = vld [vmem:[%s2773_s25 + $0x5d8] sm:$0xff] }
  0x40   : > { %333 = vst [vmem:[%s2781_s26 + $0x2d8] sm:$0xff] %v332_v27  ;;  %335 = vst [vmem:[%s2781_s26 + $0x2e0] sm:$0xff] %v334_v28  ;;  %v342_v32 = vld [vmem:[%s2773_s25 + $0x600] sm:$0xff]  ;;  %v344_v33 = vld [vmem:[%s2773_s25 + $0x608] sm:$0xff] }
  0x41   : > { %337 = vst [vmem:[%s2781_s26 + $0x2e8] sm:$0xff] %v336_v29  ;;  %339 = vst [vmem:[%s2781_s26 + $0x2f0] sm:$0xff] %v338_v30  ;;  %v346_v34 = vld [vmem:[%s2773_s25 + $0x610] sm:$0xff]  ;;  %v348_v35 = vld [vmem:[%s2773_s25 + $0x618] sm:$0xff] }
  0x42   : > { %341 = vst [vmem:[%s2781_s26 + $0x2f8] sm:$0xff] %v340_v31  ;;  %343 = vst [vmem:[%s2781_s26 + $0x300] sm:$0xff] %v342_v32  ;;  %v350_v36 = vld [vmem:[%s2773_s25 + $0x640] sm:$0xff]  ;;  %v352_v37 = vld [vmem:[%s2773_s25 + $0x648] sm:$0xff] }
  0x43   : > { %345 = vst [vmem:[%s2781_s26 + $0x308] sm:$0xff] %v344_v33  ;;  %347 = vst [vmem:[%s2781_s26 + $0x310] sm:$0xff] %v346_v34  ;;  %v354_v38 = vld [vmem:[%s2773_s25 + $0x650] sm:$0xff]  ;;  %v356_v39 = vld [vmem:[%s2773_s25 + $0x658] sm:$0xff] }
  0x44   : > { %349 = vst [vmem:[%s2781_s26 + $0x318] sm:$0xff] %v348_v35  ;;  %351 = vst [vmem:[%s2781_s26 + $0x320] sm:$0xff] %v350_v36  ;;  %v358_v40 = vld [vmem:[%s2773_s25 + $0x680] sm:$0xff]  ;;  %v360_v41 = vld [vmem:[%s2773_s25 + $0x688] sm:$0xff] }
  0x45   : > { %353 = vst [vmem:[%s2781_s26 + $0x328] sm:$0xff] %v352_v37  ;;  %355 = vst [vmem:[%s2781_s26 + $0x330] sm:$0xff] %v354_v38  ;;  %v362_v42 = vld [vmem:[%s2773_s25 + $0x690] sm:$0xff]  ;;  %v364_v43 = vld [vmem:[%s2773_s25 + $0x698] sm:$0xff] }
  0x46   : > { %357 = vst [vmem:[%s2781_s26 + $0x338] sm:$0xff] %v356_v39  ;;  %359 = vst [vmem:[%s2781_s26 + $0x340] sm:$0xff] %v358_v40  ;;  %v366_v44 = vld [vmem:[%s2773_s25 + $0x6c0] sm:$0xff]  ;;  %v368_v45 = vld [vmem:[%s2773_s25 + $0x6c8] sm:$0xff] }
  0x47   : > { %361 = vst [vmem:[%s2781_s26 + $0x348] sm:$0xff] %v360_v41  ;;  %363 = vst [vmem:[%s2781_s26 + $0x350] sm:$0xff] %v362_v42  ;;  %v370_v46 = vld [vmem:[%s2773_s25 + $0x6d0] sm:$0xff]  ;;  %v372_v47 = vld [vmem:[%s2773_s25 + $0x6d8] sm:$0xff] }
  0x48   : > { %365 = vst [vmem:[%s2781_s26 + $0x358] sm:$0xff] %v364_v43  ;;  %367 = vst [vmem:[%s2781_s26 + $0x360] sm:$0xff] %v366_v44  ;;  %v374_v48 = vld [vmem:[%s2773_s25 + $0x700] sm:$0xff]  ;;  %v376_v49 = vld [vmem:[%s2773_s25 + $0x708] sm:$0xff] }
  0x49   : > { %369 = vst [vmem:[%s2781_s26 + $0x368] sm:$0xff] %v368_v45  ;;  %371 = vst [vmem:[%s2781_s26 + $0x370] sm:$0xff] %v370_v46  ;;  %v378_v50 = vld [vmem:[%s2773_s25 + $0x710] sm:$0xff]  ;;  %v380_v51 = vld [vmem:[%s2773_s25 + $0x718] sm:$0xff] }
  0x4a   : > { %373 = vst [vmem:[%s2781_s26 + $0x378] sm:$0xff] %v372_v47  ;;  %375 = vst [vmem:[%s2781_s26 + $0x380] sm:$0xff] %v374_v48  ;;  %v382_v52 = vld [vmem:[%s2773_s25 + $0x740] sm:$0xff]  ;;  %v384_v53 = vld [vmem:[%s2773_s25 + $0x748] sm:$0xff] }
  0x4b   : > { %377 = vst [vmem:[%s2781_s26 + $0x388] sm:$0xff] %v376_v49  ;;  %379 = vst [vmem:[%s2781_s26 + $0x390] sm:$0xff] %v378_v50  ;;  %v386_v54 = vld [vmem:[%s2773_s25 + $0x750] sm:$0xff]  ;;  %v388_v55 = vld [vmem:[%s2773_s25 + $0x758] sm:$0xff] }
  0x4c   : > { %381 = vst [vmem:[%s2781_s26 + $0x398] sm:$0xff] %v380_v51  ;;  %383 = vst [vmem:[%s2781_s26 + $0x3a0] sm:$0xff] %v382_v52  ;;  %v390_v56 = vld [vmem:[%s2773_s25 + $0x780] sm:$0xff]  ;;  %v392_v57 = vld [vmem:[%s2773_s25 + $0x788] sm:$0xff] }
  0x4d   : > { %385 = vst [vmem:[%s2781_s26 + $0x3a8] sm:$0xff] %v384_v53  ;;  %387 = vst [vmem:[%s2781_s26 + $0x3b0] sm:$0xff] %v386_v54  ;;  %v394_v58 = vld [vmem:[%s2773_s25 + $0x790] sm:$0xff]  ;;  %v396_v59 = vld [vmem:[%s2773_s25 + $0x798] sm:$0xff] }
  0x4e   : > { %389 = vst [vmem:[%s2781_s26 + $0x3b8] sm:$0xff] %v388_v55  ;;  %391 = vst [vmem:[%s2781_s26 + $0x3c0] sm:$0xff] %v390_v56  ;;  %v398_v60 = vld [vmem:[%s2773_s25 + $0x7c0] sm:$0xff]  ;;  %v400_v61 = vld [vmem:[%s2773_s25 + $0x7c8] sm:$0xff] }
  0x4f   : > { %393 = vst [vmem:[%s2781_s26 + $0x3c8] sm:$0xff] %v392_v57  ;;  %395 = vst [vmem:[%s2781_s26 + $0x3d0] sm:$0xff] %v394_v58  ;;  %v402_v62 = vld [vmem:[%s2773_s25 + $0x7d0] sm:$0xff]  ;;  %v404_v63 = vld [vmem:[%s2773_s25 + $0x7d8] sm:$0xff] }
  0x50   : > { %397 = vst [vmem:[%s2781_s26 + $0x3d8] sm:$0xff] %v396_v59  ;;  %399 = vst [vmem:[%s2781_s26 + $0x3e0] sm:$0xff] %v398_v60  ;;  %v406_v0 = vld [vmem:[%s2773_s25 + $0x800] sm:$0xff]  ;;  %v408_v1 = vld [vmem:[%s2773_s25 + $0x808] sm:$0xff] }
  0x51   : > { %401 = vst [vmem:[%s2781_s26 + $0x3e8] sm:$0xff] %v400_v61  ;;  %403 = vst [vmem:[%s2781_s26 + $0x3f0] sm:$0xff] %v402_v62  ;;  %v410_v2 = vld [vmem:[%s2773_s25 + $0x810] sm:$0xff]  ;;  %v412_v3 = vld [vmem:[%s2773_s25 + $0x818] sm:$0xff] }
  0x52   : > { %405 = vst [vmem:[%s2781_s26 + $0x3f8] sm:$0xff] %v404_v63  ;;  %407 = vst [vmem:[%s2781_s26 + $0x400] sm:$0xff] %v406_v0  ;;  %v414_v4 = vld [vmem:[%s2773_s25 + $0x840] sm:$0xff]  ;;  %v416_v5 = vld [vmem:[%s2773_s25 + $0x848] sm:$0xff] }
  0x53   : > { %409 = vst [vmem:[%s2781_s26 + $0x408] sm:$0xff] %v408_v1  ;;  %411 = vst [vmem:[%s2781_s26 + $0x410] sm:$0xff] %v410_v2  ;;  %v418_v6 = vld [vmem:[%s2773_s25 + $0x850] sm:$0xff]  ;;  %v420_v7 = vld [vmem:[%s2773_s25 + $0x858] sm:$0xff] }
  0x54   : > { %413 = vst [vmem:[%s2781_s26 + $0x418] sm:$0xff] %v412_v3  ;;  %415 = vst [vmem:[%s2781_s26 + $0x420] sm:$0xff] %v414_v4  ;;  %v422_v8 = vld [vmem:[%s2773_s25 + $0x880] sm:$0xff]  ;;  %v424_v9 = vld [vmem:[%s2773_s25 + $0x888] sm:$0xff] }
  0x55   : > { %417 = vst [vmem:[%s2781_s26 + $0x428] sm:$0xff] %v416_v5  ;;  %419 = vst [vmem:[%s2781_s26 + $0x430] sm:$0xff] %v418_v6  ;;  %v426_v10 = vld [vmem:[%s2773_s25 + $0x890] sm:$0xff]  ;;  %v428_v11 = vld [vmem:[%s2773_s25 + $0x898] sm:$0xff] }
  0x56   : > { %421 = vst [vmem:[%s2781_s26 + $0x438] sm:$0xff] %v420_v7  ;;  %423 = vst [vmem:[%s2781_s26 + $0x440] sm:$0xff] %v422_v8  ;;  %v430_v12 = vld [vmem:[%s2773_s25 + $0x8c0] sm:$0xff]  ;;  %v432_v13 = vld [vmem:[%s2773_s25 + $0x8c8] sm:$0xff] }
  0x57   : > { %425 = vst [vmem:[%s2781_s26 + $0x448] sm:$0xff] %v424_v9  ;;  %427 = vst [vmem:[%s2781_s26 + $0x450] sm:$0xff] %v426_v10  ;;  %v434_v14 = vld [vmem:[%s2773_s25 + $0x8d0] sm:$0xff]  ;;  %v436_v15 = vld [vmem:[%s2773_s25 + $0x8d8] sm:$0xff] }
  0x58   : > { %429 = vst [vmem:[%s2781_s26 + $0x458] sm:$0xff] %v428_v11  ;;  %431 = vst [vmem:[%s2781_s26 + $0x460] sm:$0xff] %v430_v12  ;;  %v438_v16 = vld [vmem:[%s2773_s25 + $0x900] sm:$0xff]  ;;  %v440_v17 = vld [vmem:[%s2773_s25 + $0x908] sm:$0xff] }
  0x59   : > { %433 = vst [vmem:[%s2781_s26 + $0x468] sm:$0xff] %v432_v13  ;;  %435 = vst [vmem:[%s2781_s26 + $0x470] sm:$0xff] %v434_v14  ;;  %v442_v18 = vld [vmem:[%s2773_s25 + $0x910] sm:$0xff]  ;;  %v444_v19 = vld [vmem:[%s2773_s25 + $0x918] sm:$0xff] }
  0x5a   : > { %437 = vst [vmem:[%s2781_s26 + $0x478] sm:$0xff] %v436_v15  ;;  %439 = vst [vmem:[%s2781_s26 + $0x480] sm:$0xff] %v438_v16  ;;  %v446_v20 = vld [vmem:[%s2773_s25 + $0x940] sm:$0xff]  ;;  %v448_v21 = vld [vmem:[%s2773_s25 + $0x948] sm:$0xff] }
  0x5b   : > { %441 = vst [vmem:[%s2781_s26 + $0x488] sm:$0xff] %v440_v17  ;;  %443 = vst [vmem:[%s2781_s26 + $0x490] sm:$0xff] %v442_v18  ;;  %v450_v22 = vld [vmem:[%s2773_s25 + $0x950] sm:$0xff]  ;;  %v452_v23 = vld [vmem:[%s2773_s25 + $0x958] sm:$0xff] }
  0x5c   : > { %445 = vst [vmem:[%s2781_s26 + $0x498] sm:$0xff] %v444_v19  ;;  %447 = vst [vmem:[%s2781_s26 + $0x4a0] sm:$0xff] %v446_v20  ;;  %v454_v24 = vld [vmem:[%s2773_s25 + $0x980] sm:$0xff]  ;;  %v456_v25 = vld [vmem:[%s2773_s25 + $0x988] sm:$0xff] }
  0x5d   : > { %449 = vst [vmem:[%s2781_s26 + $0x4a8] sm:$0xff] %v448_v21  ;;  %451 = vst [vmem:[%s2781_s26 + $0x4b0] sm:$0xff] %v450_v22  ;;  %v458_v26 = vld [vmem:[%s2773_s25 + $0x990] sm:$0xff]  ;;  %v460_v27 = vld [vmem:[%s2773_s25 + $0x998] sm:$0xff] }
  0x5e   : > { %453 = vst [vmem:[%s2781_s26 + $0x4b8] sm:$0xff] %v452_v23  ;;  %455 = vst [vmem:[%s2781_s26 + $0x4c0] sm:$0xff] %v454_v24  ;;  %v462_v28 = vld [vmem:[%s2773_s25 + $0x9c0] sm:$0xff]  ;;  %v464_v29 = vld [vmem:[%s2773_s25 + $0x9c8] sm:$0xff] }
  0x5f   : > { %457 = vst [vmem:[%s2781_s26 + $0x4c8] sm:$0xff] %v456_v25  ;;  %459 = vst [vmem:[%s2781_s26 + $0x4d0] sm:$0xff] %v458_v26  ;;  %v466_v30 = vld [vmem:[%s2773_s25 + $0x9d0] sm:$0xff]  ;;  %v468_v31 = vld [vmem:[%s2773_s25 + $0x9d8] sm:$0xff] }
  0x60   : > { %461 = vst [vmem:[%s2781_s26 + $0x4d8] sm:$0xff] %v460_v27  ;;  %463 = vst [vmem:[%s2781_s26 + $0x4e0] sm:$0xff] %v462_v28 }
  0x61   : > { %465 = vst [vmem:[%s2781_s26 + $0x4e8] sm:$0xff] %v464_v29  ;;  %467 = vst [vmem:[%s2781_s26 + $0x4f0] sm:$0xff] %v466_v30 }
  0x62   : > { %469 = vst [vmem:[%s2781_s26 + $0x4f8] sm:$0xff] %v468_v31 }
  0x63 PF: > { %p2354_p5 = scmp.ge.s32.totalorder %s2715_s14, 1  ;;  %p474_p6 = scmp.lt.s32.totalorder %s2715_s14, 3 }
  0x65   : > { %p475_p7 = pnand %p2354_p5, %p474_p6 }
  0x66   : > { %s481_s27 = sand.u32 (!%p475_p7), 1, %s2707_s12   ;;  %v2717_v32 = vmov (!%p475_p7), 0   ;;  %vm749_vm0 = vcmask (!%p475_p7), 1044480   ;;  %vm750_vm1 = vcmask (!%p475_p7), 1045504   ;;  %v2718_v61 = vmov (!%p475_p7), 65535   ;;  %s2355_s7 = sshll.u32 (!%p475_p7), %s2348_s15, 3 }
  0x67   : > { %478 = sbr.rel (%p475_p7) target bundleno = 493 (0x1ed), region = 51  ;;  %809 = vmatprep.mubr.bf16.mxu0 (!%p475_p7), %v2717_v32  ;;  %850 = vmatprep.mubr.bf16.mxu1 (!%p475_p7), %v2717_v32  ;;  %v751_v62 = vsel (!%p475_p7), %vm749_vm0, 4294967295, %v2718_v61  ;;  %v3142_v26 = vld [vmem:[%s3444_s1] sm:$0x7] (!%p475_p7)  ;;  %vm745_vm2 = vcmask (!%p475_p7), 613376   ;;  %p506_p8 = scmp.lt.s32.totalorder (!%p475_p7), %s2355_s7, 15 }
  0x68   : > { %s2665_s28 = smul.u32 (!%p475_p7), 1280, %s481_s27  ;;  %2692 = vset.pattern.permute.xlu0 (!%p475_p7), %v2717_v32  ;;  %v3125_v6 = vsel (!%p475_p7), %vm750_vm1, %v751_v62, 0 }
  0x6a   : > { %s3103_s29 = scalar_lea.vmem (!%p475_p7), [#allocation2], %s2665_s28 }
  0x6b   : > { %v513_v33 = vld [vmem:[%s3103_s29] sm:$0xff] (!%p475_p7)  ;;  %v514_v35 = vld [vmem:[%s3103_s29 + $0x8] sm:$0xff] (!%p475_p7)  ;;  %v515_v14 = vld [vmem:[%s3103_s29 + $0x10] sm:$0xff] (!%p475_p7) }
  0x6c   : > { %v517_v34 = vld [vmem:[%s3103_s29 + $0x20] sm:$0xff] (!%p475_p7)  ;;  %v518_v37 = vld [vmem:[%s3103_s29 + $0x28] sm:$0xff] (!%p475_p7)  ;;  %v519_v15 = vld [vmem:[%s3103_s29 + $0x30] sm:$0xff] (!%p475_p7) }
  0x6d   : > { %v2358_v36 = vcombine.high (!%p475_p7), %v513_v33, %v517_v34  ;;  %v2357_v38 = vcombine.low (!%p475_p7), %v513_v33, %v517_v34  ;;  %v521_v39 = vld [vmem:[%s3103_s29 + $0x40] sm:$0xff] (!%p475_p7)  ;;  %v2360_v41 = vcombine.high (!%p475_p7), %v514_v35, %v518_v37  ;;  %v2359_v42 = vcombine.low (!%p475_p7), %v514_v35, %v518_v37  ;;  %v522_v44 = vld [vmem:[%s3103_s29 + $0x48] sm:$0xff] (!%p475_p7)  ;;  %v516_v16 = vld [vmem:[%s3103_s29 + $0x18] sm:$0xff] (!%p475_p7) }
  0x6e   : > { %v525_v40 = vld [vmem:[%s3103_s29 + $0x60] sm:$0xff]  ;;  %v526_v45 = vld [vmem:[%s3103_s29 + $0x68] sm:$0xff]  ;;  %v520_v17 = vld [vmem:[%s3103_s29 + $0x38] sm:$0xff]  ;;  %v2362_v20 = vcombine.high %v515_v14, %v519_v15  ;;  %v2361_v27 = vcombine.low %v515_v14, %v519_v15  ;;  %s3451_s7 = smov (!%p506_p8, %s2355_s7), 15 }
  0x6f   : > { %v2366_v43 = vcombine.high %v521_v39, %v525_v40  ;;  %v529_v46 = vld [vmem:[%s3103_s29 + $0x80] sm:$0xff]  ;;  %777 = vmatprep.subr.bf16.mxu0 %v2358_v36  ;;  %v2368_v47 = vcombine.high %v522_v44, %v526_v45  ;;  %v530_v49 = vld [vmem:[%s3103_s29 + $0x88] sm:$0xff]  ;;  %818 = vmatprep.subr.bf16.mxu1 %v2360_v41  ;;  %v2365_v51 = vcombine.low %v521_v39, %v525_v40  ;;  %v523_v22 = vld [vmem:[%s3103_s29 + $0x50] sm:$0xff]  ;;  %s2356_s8 = sshll.u32 %s3451_s7, 2 }
  0x70   : > { %v533_v48 = vld [vmem:[%s3103_s29 + $0xa0] sm:$0xff]  ;;  %v534_v50 = vld [vmem:[%s3103_s29 + $0xa8] sm:$0xff]  ;;  %778 = vmatpush1.bf16.msra.mxu0 %v2357_v38  ;;  %819 = vmatpush1.bf16.msra.mxu1 %v2359_v42  ;;  %v2367_v52 = vcombine.low %v522_v44, %v526_v45  ;;  %v2364_v21 = vcombine.high %v516_v16, %v520_v17  ;;  %v527_v23 = vld [vmem:[%s3103_s29 + $0x70] sm:$0xff]  ;;  %v2363_v28 = vcombine.low %v516_v16, %v520_v17  ;;  %s509_s11 = scalar_lea.vmem %s3446_s3, %s2356_s8 }
  0x71   : > { %779 = vmatprep.subr.bf16.mxu0 %v2366_v43  ;;  %v2374_v53 = vcombine.high %v529_v46, %v533_v48  ;;  %v537_v54 = vld [vmem:[%s3103_s29 + $0xc0] sm:$0xff]  ;;  %820 = vmatprep.subr.bf16.mxu1 %v2368_v47  ;;  %v2376_v56 = vcombine.high %v530_v49, %v534_v50  ;;  %v538_v57 = vld [vmem:[%s3103_s29 + $0xc8] sm:$0xff]  ;;  %v2373_v1 = vcombine.low %v529_v46, %v533_v48  ;;  %v524_v24 = vld [vmem:[%s3103_s29 + $0x58] sm:$0xff] }
  0x72   : > { %v541_v55 = vld [vmem:[%s3103_s29 + $0xe0] sm:$0xff]  ;;  %v542_v60 = vld [vmem:[%s3103_s29 + $0xe8] sm:$0xff]  ;;  %v2375_v2 = vcombine.low %v530_v49, %v534_v50  ;;  %v528_v25 = vld [vmem:[%s3103_s29 + $0x78] sm:$0xff]  ;;  %v2370_v29 = vcombine.high %v523_v22, %v527_v23  ;;  %v2369_v36 = vcombine.low %v523_v22, %v527_v23 }
  0x73   : > { %v545_v58 = vld [vmem:[%s3103_s29 + $0x100] sm:$0xff]  ;;  %v546_v63 = vld [vmem:[%s3103_s29 + $0x108] sm:$0xff]  ;;  %v2382_v3 = vcombine.high %v537_v54, %v541_v55  ;;  %v2384_v5 = vcombine.high %v538_v57, %v542_v60  ;;  %v2381_v8 = vcombine.low %v537_v54, %v541_v55  ;;  %v2383_v10 = vcombine.low %v538_v57, %v542_v60  ;;  %v531_v31 = vld [vmem:[%s3103_s29 + $0x90] sm:$0xff] }
  0x74   : > { %v549_v59 = vld [vmem:[%s3103_s29 + $0x120] sm:$0x33]  ;;  %v550_v0 = vld [vmem:[%s3103_s29 + $0x128] sm:$0x33]  ;;  %780 = vmatpush1.bf16.msra.mxu0 %v2365_v51  ;;  %821 = vmatpush1.bf16.msra.mxu1 %v2367_v52  ;;  %v2372_v30 = vcombine.high %v524_v24, %v528_v25  ;;  %v535_v33 = vld [vmem:[%s3103_s29 + $0xb0] sm:$0xff]  ;;  %v2371_v38 = vcombine.low %v524_v24, %v528_v25 }
  0x75   : > { %781 = vmatprep.subr.bf16.mxu0 %v2374_v53  ;;  %v2390_v4 = vcombine.high %v545_v58, %v549_v59  ;;  %822 = vmatprep.subr.bf16.mxu1 %v2376_v56  ;;  %v2392_v7 = vcombine.high %v546_v63, %v550_v0  ;;  %v2389_v9 = vcombine.low %v545_v58, %v549_v59  ;;  %v532_v34 = vld [vmem:[%s3103_s29 + $0x98] sm:$0xff]  ;;  %v539_v37 = vld [vmem:[%s3103_s29 + $0xd0] sm:$0xff]  ;;  %v2517_v61 = vld [vmem:[%s3103_s29 + $0x380] sm:$0xff] }
  0x76   : > { %v2391_v12 = vcombine.low %v546_v63, %v550_v0  ;;  %v536_v35 = vld [vmem:[%s3103_s29 + $0xb8] sm:$0xff]  ;;  %v2378_v39 = vcombine.high %v531_v31, %v535_v33  ;;  %v543_v40 = vld [vmem:[%s3103_s29 + $0xf0] sm:$0xff]  ;;  %v2377_v51 = vcombine.low %v531_v31, %v535_v33  ;;  %v2521_v62 = vld [vmem:[%s3103_s29 + $0x3a0] sm:$0x33] }
  0x77   : > { %v757_v11 = vand.u32 %v2390_v4, %v3125_v6  ;;  %v763_v13 = vand.u32 %v2392_v7, %v3125_v6  ;;  %v754_v18 = vand.u32 %v2389_v9, %v3125_v6  ;;  %v540_v41 = vld [vmem:[%s3103_s29 + $0xd8] sm:$0xff]  ;;  %v547_v42 = vld [vmem:[%s3103_s29 + $0x110] sm:$0xff]  ;;  %v2380_v43 = vcombine.high %v532_v34, %v536_v35  ;;  %v2518_v63 = vld [vmem:[%s3103_s29 + $0x388] sm:$0xff] }
  0x78   : > { %782 = vmatpush1.bf16.msra.mxu0 %v2373_v1  ;;  %823 = vmatpush1.bf16.msra.mxu1 %v2375_v2  ;;  %v760_v19 = vand.u32 %v2391_v12, %v3125_v6  ;;  %v551_v44 = vld [vmem:[%s3103_s29 + $0x130] sm:$0x33]  ;;  %v3159_v45 = vld [vmem:[%s3103_s29 + $0x258] sm:$0xff]  ;;  %v2379_v52 = vcombine.low %v532_v34, %v536_v35  ;;  %v2386_v53 = vcombine.high %v539_v37, %v543_v40  ;;  %v2405_v7 = vld [vmem:[%s3103_s29 + $0x160] sm:$0xff] }
  0x79   : > { %783 = vmatprep.subr.bf16.mxu0 %v2382_v3  ;;  %824 = vmatprep.subr.bf16.mxu1 %v2384_v5  ;;  %v3162_v46 = vld [vmem:[%s3103_s29 + $0x278] sm:$0x33]  ;;  %v2394_v54 = vcombine.high %v547_v42, %v551_v44  ;;  %v2385_v58 = vcombine.low %v539_v37, %v543_v40  ;;  %v2393_v60 = vcombine.low %v547_v42, %v551_v44  ;;  %v2522_v3 = vld [vmem:[%s3103_s29 + $0x3a8] sm:$0x33]  ;;  %v2401_v5 = vld [vmem:[%s3103_s29 + $0x140] sm:$0xff] }
  0x7a   : > { %v544_v47 = vld [vmem:[%s3103_s29 + $0xf8] sm:$0xff]  ;;  %v2479_v50 = vcombine.low %v3159_v45, %v3162_v46  ;;  %v2557_v2 = vcombine.low %v2517_v61, %v2521_v62  ;;  %v2559_v9 = vcombine.low %v2518_v63, %v2522_v3  ;;  %v2406_v12 = vld [vmem:[%s3103_s29 + $0x168] sm:$0xff]  ;;  %v2519_v25 = vld [vmem:[%s3103_s29 + $0x390] sm:$0xff] }
  0x7b   : > { %v548_v48 = vld [vmem:[%s3103_s29 + $0x118] sm:$0xff]  ;;  %v2388_v56 = vcombine.high %v540_v41, %v544_v47  ;;  %v2387_v59 = vcombine.low %v540_v41, %v544_v47  ;;  %v769_v0 = vand.u32 %v2394_v54, %v3125_v6  ;;  %v766_v14 = vand.u32 %v2393_v60, %v3125_v6  ;;  %v2410_v23 = vld [vmem:[%s3103_s29 + $0x188] sm:$0xff]  ;;  %v2421_v40 = vld [vmem:[%s3103_s29 + $0x1e0] sm:$0xff] }
  0x7c   : > { %784 = vmatpush1.bf16.msra.mxu0 %v2381_v8  ;;  %825 = vmatpush1.bf16.msra.mxu1 %v2383_v10  ;;  %v552_v49 = vld [vmem:[%s3103_s29 + $0x138] sm:$0x33]  ;;  %v3171_v55 = vand.u32 %v2479_v50, %v3125_v6  ;;  %v2558_v8 = vcombine.high %v2517_v61, %v2521_v62  ;;  %v2560_v10 = vcombine.high %v2518_v63, %v2522_v3  ;;  %v2414_v24 = vld [vmem:[%s3103_s29 + $0x1a8] sm:$0xff]  ;;  %v3227_v50 = vld [vmem:[%s3103_s29 + $0x220] sm:$0xff] }
  0x7d   : > { %785 = vmatprep.subr.bf16.mxu0 %v757_v11  ;;  %826 = vmatprep.subr.bf16.mxu1 %v763_v13  ;;  %v2396_v57 = vcombine.high %v548_v48, %v552_v49  ;;  %v2395_v1 = vcombine.low %v548_v48, %v552_v49  ;;  %v2402_v11 = vld [vmem:[%s3103_s29 + $0x148] sm:$0xff]  ;;  %v3184_v13 = vand.u32 %v2557_v2, %v3125_v6  ;;  %v3224_v49 = vld [vmem:[%s3103_s29 + $0x200] sm:$0xff] }
  0x7e   : > { %v3188_v15 = vand.u32 %v2558_v8, %v3125_v6  ;;  %v3191_v16 = vand.u32 %v2560_v10, %v3125_v6  ;;  %v3194_v17 = vand.u32 %v2559_v9, %v3125_v6  ;;  %v2444_v22 = vcombine.high %v2402_v11, %v2406_v12  ;;  %v2418_v41 = vld [vmem:[%s3103_s29 + $0x1c8] sm:$0xff]  ;;  %v2605_v60 = vld [vmem:[%s3103_s29 + $0x4e0] sm:$0x33] }
  0x7f   : > { %v775_v4 = vand.u32 %v2396_v57, %v3125_v6  ;;  %v2422_v48 = vld [vmem:[%s3103_s29 + $0x1e8] sm:$0xff]  ;;  %v2466_v8 = vcombine.high %v3224_v49, %v3227_v50 }
  0x80   : > { %786 = vmatpush1.bf16.msra.mxu0 %v754_v18  ;;  %827 = vmatpush1.bf16.msra.mxu1 %v760_v19  ;;  %v772_v18 = vand.u32 %v2395_v1, %v3125_v6  ;;  %v2442_v19 = vcombine.high %v2401_v5, %v2405_v7  ;;  %v3236_v54 = vld [vmem:[%s3103_s29 + $0x248] sm:$0xff]  ;;  %v2460_v62 = vcombine.high %v2418_v41, %v2422_v48 }
  0x81   : > { %859 = vmatprep.subr.bf16.mxu0 %v2362_v20  ;;  %900 = vmatprep.subr.bf16.mxu1 %v2364_v21  ;;  %v2409_v20 = vld [vmem:[%s3103_s29 + $0x180] sm:$0xff]  ;;  %v2602_v63 = vld [vmem:[%s3103_s29 + $0x4c8] sm:$0xff]  ;;  %v2459_v1 = vcombine.low %v2418_v41, %v2422_v48  ;;  %v2408_v41 = vld [vmem:[%s3103_s29 + $0x178] sm:$0xff] }
  0x82   : > { %v2413_v21 = vld [vmem:[%s3103_s29 + $0x1a0] sm:$0xff]  ;;  %v2426_v2 = vld [vmem:[%s3103_s29 + $0x208] sm:$0xff] }
  0x83   : > { %2397 = vmatmul.mubr.msk.bf16.vlgmr.msra.gmra.mrb[0].mxu0 %vm745_vm2, %v3142_v26  ;;  %2398 = vmatmul.mubr.msk.bf16.vlgmr.msra.gmra.mrb[0].mxu1 %vm745_vm2, %v3142_v26  ;;  %v2450_v37 = vcombine.high %v2409_v20, %v2413_v21  ;;  %v2430_v3 = vld [vmem:[%s3103_s29 + $0x228] sm:$0xff] }
  0x84   : > { %860 = vmatpush1.bf16.msra.mxu0 %v2361_v27  ;;  %901 = vmatpush1.bf16.msra.mxu1 %v2363_v28  ;;  %v2441_v27 = vcombine.low %v2401_v5, %v2405_v7  ;;  %v2523_v28 = vld [vmem:[%s3103_s29 + $0x3b0] sm:$0x33] }
  0x85   : > { %861 = vmatprep.subr.bf16.mxu0 %v2370_v29  ;;  %902 = vmatprep.subr.bf16.mxu1 %v2372_v30  ;;  %v2520_v29 = vld [vmem:[%s3103_s29 + $0x398] sm:$0xff]  ;;  %v2561_v31 = vcombine.low %v2519_v25, %v2523_v28  ;;  %v2562_v33 = vcombine.high %v2519_v25, %v2523_v28  ;;  %v2603_v25 = vld [vmem:[%s3103_s29 + $0x4d0] sm:$0xff] }
  0x86   : > { %891 = vmatprep.mubr.bf16.mxu0 %v2717_v32  ;;  %932 = vmatprep.mubr.bf16.mxu1 %v2717_v32  ;;  %v2524_v30 = vld [vmem:[%s3103_s29 + $0x3b8] sm:$0x33] }
  0x87   : > { %v2563_v34 = vcombine.low %v2520_v29, %v2524_v30  ;;  %v2564_v35 = vcombine.high %v2520_v29, %v2524_v30  ;;  %v3209_v42 = vand.u32 %v2562_v33, %v3125_v6  ;;  %v3215_v44 = vand.u32 %v2561_v31, %v3125_v6  ;;  %v2604_v28 = vld [vmem:[%s3103_s29 + $0x4d8] sm:$0xff] }
  0x88   : > { %862 = vmatpush1.bf16.msra.mxu0 %v2369_v36  ;;  %903 = vmatpush1.bf16.msra.mxu1 %v2371_v38  ;;  %v2443_v36 = vcombine.low %v2402_v11, %v2406_v12  ;;  %v2452_v38 = vcombine.high %v2410_v23, %v2414_v24  ;;  %v2608_v33 = vld [vmem:[%s3103_s29 + $0x4f8] sm:$0x33] }
  0x89   : > { %863 = vmatprep.subr.bf16.mxu0 %v2378_v39  ;;  %904 = vmatprep.subr.bf16.mxu1 %v2380_v43  ;;  %v2417_v39 = vld [vmem:[%s3103_s29 + $0x1c0] sm:$0xff]  ;;  %v3212_v43 = vand.u32 %v2564_v35, %v3125_v6  ;;  %v3218_v47 = vand.u32 %v2563_v34, %v3125_v6  ;;  %v2403_v35 = vld [vmem:[%s3103_s29 + $0x150] sm:$0xff] }
  0x8a   : > { %v2458_v57 = vcombine.high %v2417_v39, %v2421_v40  ;;  %v2457_v61 = vcombine.low %v2417_v39, %v2421_v40  ;;  %v2228_v34 = vld [vmem:[%s3445_s2] sm:$0x3f]  ;;  %v2648_v39 = vcombine.high %v2604_v28, %v2608_v33  ;;  %v2404_v40 = vld [vmem:[%s3103_s29 + $0x158] sm:$0xff] }
  0x8b   : > { %2231 = vperm.xlu0 %2692, %v2228_v34  }
  0x8c   : > { %864 = vmatpush1.bf16.msra.mxu0 %v2377_v51  ;;  %905 = vmatpush1.bf16.msra.mxu1 %v2379_v52  ;;  %v2449_v51 = vcombine.low %v2409_v20, %v2413_v21  ;;  %v3232_v52 = vld [vmem:[%s3103_s29 + $0x240] sm:$0xff]  ;;  %v2465_v21 = vcombine.low %v3224_v49, %v3227_v50 }
  0x8d   : > { %865 = vmatprep.subr.bf16.mxu0 %v2386_v53  ;;  %906 = vmatprep.subr.bf16.mxu1 %v2388_v56  ;;  %v2437_v53 = vld [vmem:[%s3103_s29 + $0x260] sm:$0x33]  ;;  %v2451_v56 = vcombine.low %v2410_v23, %v2414_v24 }
  0x8e   : > { %v2474_v9 = vcombine.high %v3232_v52, %v2437_v53  ;;  %v2473_v23 = vcombine.low %v3232_v52, %v2437_v53 }
  0x90   : > { %866 = vmatpush1.bf16.msra.mxu0 %v2385_v58  ;;  %907 = vmatpush1.bf16.msra.mxu1 %v2387_v59  ;;  %v2438_v58 = vld [vmem:[%s3103_s29 + $0x268] sm:$0x33]  ;;  %v2601_v59 = vld [vmem:[%s3103_s29 + $0x4c0] sm:$0xff]  ;;  %v1178_v29 = vand.u32 %v2474_v9, %v3125_v6  ;;  %v1175_v49 = vand.u32 %v2473_v23, %v3125_v6  ;;  %v2427_v9 = vld [vmem:[%s3103_s29 + $0x210] sm:$0xff] }
  0x91   : > { %867 = vmatprep.subr.bf16.mxu0 %v769_v0  ;;  %908 = vmatprep.subr.bf16.mxu1 %v775_v4  ;;  %v2606_v0 = vld [vmem:[%s3103_s29 + $0x4e8] sm:$0x33]  ;;  %v2641_v4 = vcombine.low %v2601_v59, %v2605_v60  ;;  %v2642_v5 = vcombine.high %v2601_v59, %v2605_v60  ;;  %v2476_v10 = vcombine.high %v3236_v54, %v2438_v58  ;;  %v2412_v59 = vld [vmem:[%s3103_s29 + $0x198] sm:$0xff] }
  0x92   : > { %v2643_v7 = vcombine.low %v2602_v63, %v2606_v0  ;;  %v2644_v11 = vcombine.high %v2602_v63, %v2606_v0  ;;  %v2475_v24 = vcombine.low %v3236_v54, %v2438_v58  ;;  %v2415_v58 = vld [vmem:[%s3103_s29 + $0x1b0] sm:$0xff]  ;;  %v2416_v60 = vld [vmem:[%s3103_s29 + $0x1b8] sm:$0xff] }
  0x93   : > { %v3252_v12 = vand.u32 %v2642_v5, %v3125_v6  ;;  %v1184_v30 = vand.u32 %v2476_v10, %v3125_v6  ;;  %v2456_v0 = vcombine.high %v2412_v59, %v2416_v60  ;;  %v2432_v23 = vld [vmem:[%s3103_s29 + $0x238] sm:$0xff] }
  0x94   : > { %868 = vmatpush1.bf16.msra.mxu0 %v766_v14  ;;  %909 = vmatpush1.bf16.msra.mxu1 %v772_v18  ;;  %v3255_v14 = vand.u32 %v2641_v4, %v3125_v6  ;;  %v3258_v18 = vand.u32 %v2643_v7, %v3125_v6  ;;  %v3261_v20 = vand.u32 %v2644_v11, %v3125_v6  ;;  %v2424_v4 = vld [vmem:[%s3103_s29 + $0x1f8] sm:$0xff]  ;;  %v2431_v11 = vld [vmem:[%s3103_s29 + $0x230] sm:$0xff] }
  0x95   : > { %1198 = vmatprep.subr.bf16.mxu0 %v2442_v19  ;;  %1239 = vmatprep.subr.bf16.mxu1 %v2444_v22  ;;  %v2468_v19 = vcombine.high %v2426_v2, %v2430_v3  ;;  %v2467_v22 = vcombine.low %v2426_v2, %v2430_v3  ;;  %v1181_v53 = vand.u32 %v2475_v24, %v3125_v6  ;;  %v2423_v2 = vld [vmem:[%s3103_s29 + $0x1f0] sm:$0xff]  ;;  %v2420_v3 = vld [vmem:[%s3103_s29 + $0x1d8] sm:$0xff] }
  0x96   : > { %v2455_v7 = vcombine.low %v2412_v59, %v2416_v60  ;;  %v2464_v10 = vcombine.high %v2420_v3, %v2424_v4  ;;  %v2501_v60 = vld [vmem:[%s3103_s29 + $0x300] sm:$0xff] }
  0x97   : > { %2399 = vmatmul.mubr.msk.bf16.vlgmr.msra.gmra.mrb[4].mxu0 %vm745_vm2, %v3142_v26  ;;  %2400 = vmatmul.mubr.msk.bf16.vlgmr.msra.gmra.mrb[4].mxu1 %vm745_vm2, %v3142_v26 }
  0x98   : > { %1199 = vmatpush1.bf16.msra.mxu0 %v2441_v27  ;;  %1240 = vmatpush1.bf16.msra.mxu1 %v2443_v36  ;;  %v2607_v27 = vld [vmem:[%s3103_s29 + $0x4f0] sm:$0x33] }
  0x99   : > { %1200 = vmatprep.subr.bf16.mxu0 %v2450_v37  ;;  %1241 = vmatprep.subr.bf16.mxu1 %v2452_v38  ;;  %v2645_v31 = vcombine.low %v2603_v25, %v2607_v27  ;;  %v2407_v36 = vld [vmem:[%s3103_s29 + $0x170] sm:$0xff]  ;;  %v2646_v37 = vcombine.high %v2603_v25, %v2607_v27  ;;  %v2647_v38 = vcombine.low %v2604_v28, %v2608_v33 }
  0x9a   : > { %1230 = vmatprep.mubr.bf16.mxu0 %v2717_v32  ;;  %1271 = vmatprep.mubr.bf16.mxu1 %v2717_v32  ;;  %v2446_v54 = vcombine.high %v2403_v35, %v2407_v36  ;;  %v2463_v25 = vcombine.low %v2420_v3, %v2424_v4  ;;  %v2470_v27 = vcombine.high %v2427_v9, %v2431_v11  ;;  %v2509_v3 = vld [vmem:[%s3103_s29 + $0x340] sm:$0xff] }
  0x9b   : > { %v3281_v48 = vand.u32 %v2645_v31, %v3125_v6  ;;  %v3285_v50 = vand.u32 %v2646_v37, %v3125_v6  ;;  %v3291_v52 = vand.u32 %v2647_v38, %v3125_v6  ;;  %v2469_v31 = vcombine.low %v2427_v9, %v2431_v11  ;;  %v2485_v37 = vld [vmem:[%s3103_s29 + $0x280] sm:$0xff] }
  0x9c   : > { %1201 = vmatpush1.bf16.msra.mxu0 %v2449_v51  ;;  %1242 = vmatpush1.bf16.msra.mxu1 %v2451_v56  ;;  %v3288_v51 = vand.u32 %v2648_v39, %v3125_v6  ;;  %v2448_v56 = vcombine.high %v2404_v40, %v2408_v41  ;;  %v2489_v38 = vld [vmem:[%s3103_s29 + $0x2a0] sm:$0xff]  ;;  %v2486_v39 = vld [vmem:[%s3103_s29 + $0x288] sm:$0xff] }
  0x9d   : > { %1202 = vmatprep.subr.bf16.mxu0 %v2458_v57  ;;  %1243 = vmatprep.subr.bf16.mxu1 %v2460_v62  ;;  %v2411_v57 = vld [vmem:[%s3103_s29 + $0x190] sm:$0xff]  ;;  %v2447_v62 = vcombine.low %v2404_v40, %v2408_v41  ;;  %v2490_v40 = vld [vmem:[%s3103_s29 + $0x2a8] sm:$0xff]  ;;  %v2513_v4 = vld [vmem:[%s3103_s29 + $0x360] sm:$0xff] }
  0x9e   : > { %v2454_v63 = vcombine.high %v2411_v57, %v2415_v58  ;;  %v2453_v5 = vcombine.low %v2411_v57, %v2415_v58  ;;  %v2528_v41 = vcombine.high %v2486_v39, %v2490_v40  ;;  %v2525_v57 = vcombine.low %v2485_v37, %v2489_v38 }
  0x9f   : > { %v2527_v58 = vcombine.low %v2486_v39, %v2490_v40  ;;  %v2508_v39 = vld [vmem:[%s3103_s29 + $0x338] sm:$0xff] }
  0xa0   : > { %1203 = vmatpush1.bf16.msra.mxu0 %v2457_v61  ;;  %1244 = vmatpush1.bf16.msra.mxu1 %v2459_v1  ;;  %v2445_v61 = vcombine.low %v2403_v35, %v2407_v36  ;;  %v2419_v1 = vld [vmem:[%s3103_s29 + $0x1d0] sm:$0xff] }
  0xa1   : > { %1204 = vmatprep.subr.bf16.mxu0 %v2466_v8  ;;  %1245 = vmatprep.subr.bf16.mxu1 %v2468_v19  ;;  %v2462_v8 = vcombine.high %v2419_v1, %v2423_v2  ;;  %v2435_v19 = vld [vmem:[%s3103_s29 + $0x250] sm:$0xff]  ;;  %v2461_v24 = vcombine.low %v2419_v1, %v2423_v2 }
  0xa4   : > { %1205 = vmatpush1.bf16.msra.mxu0 %v2465_v21  ;;  %1246 = vmatpush1.bf16.msra.mxu1 %v2467_v22  ;;  %v2439_v21 = vld [vmem:[%s3103_s29 + $0x270] sm:$0x33]  ;;  %v2428_v22 = vld [vmem:[%s3103_s29 + $0x218] sm:$0xff] }
  0xa5   : > { %1206 = vmatprep.subr.bf16.mxu0 %v1178_v29  ;;  %1247 = vmatprep.subr.bf16.mxu1 %v1184_v30  ;;  %v2478_v28 = vcombine.high %v2435_v19, %v2439_v21  ;;  %v2472_v29 = vcombine.high %v2428_v22, %v2432_v23  ;;  %v2480_v30 = vcombine.high %v3159_v45, %v3162_v46 }
  0xa6   : > { %v2477_v33 = vcombine.low %v2435_v19, %v2439_v21  ;;  %v2471_v34 = vcombine.low %v2428_v22, %v2432_v23  ;;  %v2526_v46 = vcombine.high %v2485_v37, %v2489_v38  ;;  %v2549_v19 = vcombine.low %v2509_v3, %v2513_v4  ;;  %v2487_v22 = vld [vmem:[%s3103_s29 + $0x290] sm:$0xff]  ;;  %v2504_v38 = vld [vmem:[%s3103_s29 + $0x318] sm:$0xff] }
  0xa7   : > { %v1190_v35 = vand.u32 %v2478_v28, %v3125_v6  ;;  %v1196_v36 = vand.u32 %v2480_v30, %v3125_v6  ;;  %v2491_v23 = vld [vmem:[%s3103_s29 + $0x2b0] sm:$0xff] }
  0xa8   : > { %1207 = vmatpush1.bf16.msra.mxu0 %v1175_v49  ;;  %1248 = vmatpush1.bf16.msra.mxu1 %v1181_v53  ;;  %v1187_v45 = vand.u32 %v2477_v33, %v3125_v6  ;;  %v2493_v49 = vld [vmem:[%s3103_s29 + $0x2c0] sm:$0xff]  ;;  %v2499_v30 = vld [vmem:[%s3103_s29 + $0x2f0] sm:$0xff]  ;;  %v2500_v33 = vld [vmem:[%s3103_s29 + $0x2f8] sm:$0xff] }
  0xa9   : > { %1280 = vmatprep.subr.bf16.mxu0 %v2446_v54  ;;  %1321 = vmatprep.subr.bf16.mxu1 %v2448_v56  ;;  %v2497_v53 = vld [vmem:[%s3103_s29 + $0x2e0] sm:$0xff]  ;;  %v2494_v54 = vld [vmem:[%s3103_s29 + $0x2c8] sm:$0xff]  ;;  %v2507_v37 = vld [vmem:[%s3103_s29 + $0x330] sm:$0xff] }
  0xaa   : > { %v2498_v56 = vld [vmem:[%s3103_s29 + $0x2e8] sm:$0xff]  ;;  %v2534_v6 = vcombine.high %v2493_v49, %v2497_v53 }
  0xab   : > { %2481 = vmatmul.mubr.msk.bf16.vlgmr.msra.gmra.mrb[8].mxu0 %vm745_vm2, %v3142_v26  ;;  %2482 = vmatmul.mubr.msk.bf16.vlgmr.msra.gmra.mrb[8].mxu1 %vm745_vm2, %v3142_v26  ;;  %v2536_v59 = vcombine.high %v2494_v54, %v2498_v56 }
  0xac   : > { %1281 = vmatpush1.bf16.msra.mxu0 %v2445_v61  ;;  %1322 = vmatpush1.bf16.msra.mxu1 %v2447_v62  ;;  %v2505_v61 = vld [vmem:[%s3103_s29 + $0x320] sm:$0xff]  ;;  %v2502_v62 = vld [vmem:[%s3103_s29 + $0x308] sm:$0xff] }
  0xad   : > { %1282 = vmatprep.subr.bf16.mxu0 %v2454_v63  ;;  %1323 = vmatprep.subr.bf16.mxu1 %v2456_v0  ;;  %v2506_v63 = vld [vmem:[%s3103_s29 + $0x328] sm:$0xff]  ;;  %v2535_v0 = vcombine.low %v2494_v54, %v2498_v56  ;;  %v2542_v1 = vcombine.high %v2501_v60, %v2505_v61  ;;  %v2547_v56 = vcombine.low %v2504_v38, %v2508_v39 }
  0xae   : > { %1312 = vmatprep.mubr.bf16.mxu0 %v2717_v32  ;;  %1353 = vmatprep.mubr.bf16.mxu1 %v2717_v32  ;;  %v2544_v2 = vcombine.high %v2502_v62, %v2506_v63  ;;  %v2543_v9 = vcombine.low %v2502_v62, %v2506_v63  ;;  %v2570_v62 = vld [vmem:[%s3103_s29 + $0x3c8] sm:$0xff] }
  0xaf   : > { %v2574_v63 = vld [vmem:[%s3103_s29 + $0x3e8] sm:$0xff] }
  0xb0   : > { %1283 = vmatpush1.bf16.msra.mxu0 %v2453_v5  ;;  %1324 = vmatpush1.bf16.msra.mxu1 %v2455_v7  ;;  %v2510_v5 = vld [vmem:[%s3103_s29 + $0x348] sm:$0xff] }
  0xb1   : > { %1284 = vmatprep.subr.bf16.mxu0 %v2462_v8  ;;  %1325 = vmatprep.subr.bf16.mxu1 %v2464_v10  ;;  %v2514_v7 = vld [vmem:[%s3103_s29 + $0x368] sm:$0xff]  ;;  %v2541_v8 = vcombine.low %v2501_v60, %v2505_v61  ;;  %v2550_v10 = vcombine.high %v2509_v3, %v2513_v4  ;;  %v2569_v60 = vld [vmem:[%s3103_s29 + $0x3c0] sm:$0xff] }
  0xb2   : > { %v2552_v11 = vcombine.high %v2510_v5, %v2514_v7  ;;  %v2551_v21 = vcombine.low %v2510_v5, %v2514_v7  ;;  %v2573_v61 = vld [vmem:[%s3103_s29 + $0x3e0] sm:$0xff]  ;;  %v2578_v3 = vld [vmem:[%s3103_s29 + $0x408] sm:$0xff]  ;;  %v2611_v7 = vcombine.low %v2570_v62, %v2574_v63 }
  0xb3   : > { %v2582_v4 = vld [vmem:[%s3103_s29 + $0x428] sm:$0xff]  ;;  %v2609_v5 = vcombine.low %v2569_v60, %v2573_v61 }
  0xb4   : > { %1285 = vmatpush1.bf16.msra.mxu0 %v2461_v24  ;;  %1326 = vmatpush1.bf16.msra.mxu1 %v2463_v25  ;;  %v2488_v24 = vld [vmem:[%s3103_s29 + $0x298] sm:$0xff] }
  0xb5   : > { %1286 = vmatprep.subr.bf16.mxu0 %v2470_v27  ;;  %1327 = vmatprep.subr.bf16.mxu1 %v2472_v29  ;;  %v2492_v25 = vld [vmem:[%s3103_s29 + $0x2b8] sm:$0xff]  ;;  %v2530_v27 = vcombine.high %v2487_v22, %v2491_v23  ;;  %v2495_v29 = vld [vmem:[%s3103_s29 + $0x2d0] sm:$0xff] }
  0xb6   : > { %v2532_v28 = vcombine.high %v2488_v24, %v2492_v25 }
  0xb8   : > { %1287 = vmatpush1.bf16.msra.mxu0 %v2469_v31  ;;  %1328 = vmatpush1.bf16.msra.mxu1 %v2471_v34  ;;  %v2496_v31 = vld [vmem:[%s3103_s29 + $0x2d8] sm:$0xff]  ;;  %v2529_v34 = vcombine.low %v2487_v22, %v2491_v23  ;;  %v2593_v22 = vld [vmem:[%s3103_s29 + $0x480] sm:$0xff] }
  0xb9   : > { %1288 = vmatprep.subr.bf16.mxu0 %v1190_v35  ;;  %1329 = vmatprep.subr.bf16.mxu1 %v1196_v36  ;;  %v2531_v35 = vcombine.low %v2488_v24, %v2492_v25  ;;  %v2540_v36 = vcombine.high %v2496_v31, %v2500_v33  ;;  %v2597_v23 = vld [vmem:[%s3103_s29 + $0x4a0] sm:$0xff]  ;;  %v2594_v24 = vld [vmem:[%s3103_s29 + $0x488] sm:$0xff] }
  0xba   : > { %v2598_v25 = vld [vmem:[%s3103_s29 + $0x4a8] sm:$0xff] }
  0xbc   : > { %1289 = vmatpush1.bf16.msra.mxu0 %v1187_v45  ;;  %1330 = vmatpush1.bf16.msra.mxu1 %v3171_v55  ;;  %v2533_v55 = vcombine.low %v2493_v49, %v2497_v53  ;;  %v2548_v45 = vcombine.high %v2504_v38, %v2508_v39  ;;  %v2512_v49 = vld [vmem:[%s3103_s29 + $0x358] sm:$0xff]  ;;  %v2579_v38 = vld [vmem:[%s3103_s29 + $0x410] sm:$0xff] }
  0xbd   : > { %1627 = vmatprep.subr.bf16.mxu0 %v2526_v46  ;;  %1668 = vmatprep.subr.bf16.mxu1 %v2528_v41  ;;  %v2511_v46 = vld [vmem:[%s3103_s29 + $0x350] sm:$0xff]  ;;  %v2516_v53 = vld [vmem:[%s3103_s29 + $0x378] sm:$0xff] }
  0xbe   : > { %v2515_v41 = vld [vmem:[%s3103_s29 + $0x370] sm:$0xff] }
  0xbf   : > { %2483 = vmatmul.mubr.msk.bf16.vlgmr.msra.gmra.mrb[12].mxu0 %vm745_vm2, %v3142_v26  ;;  %2484 = vmatmul.mubr.msk.bf16.vlgmr.msra.gmra.mrb[12].mxu1 %vm745_vm2, %v3142_v26  ;;  %v2583_v39 = vld [vmem:[%s3103_s29 + $0x430] sm:$0xff] }
  0xc0   : > { %1628 = vmatpush1.bf16.msra.mxu0 %v2525_v57  ;;  %1669 = vmatpush1.bf16.msra.mxu1 %v2527_v58  ;;  %v2554_v57 = vcombine.high %v2511_v46, %v2515_v41  ;;  %v2556_v58 = vcombine.high %v2512_v49, %v2516_v53 }
  0xc1   : > { %1629 = vmatprep.subr.bf16.mxu0 %v2534_v6  ;;  %1670 = vmatprep.subr.bf16.mxu1 %v2536_v59  ;;  %v2553_v6 = vcombine.low %v2511_v46, %v2515_v41  ;;  %v2555_v59 = vcombine.low %v2512_v49, %v2516_v53  ;;  %v2591_v41 = vld [vmem:[%s3103_s29 + $0x470] sm:$0xff]  ;;  %v2588_v49 = vld [vmem:[%s3103_s29 + $0x458] sm:$0xff] }
  0xc2   : > { %1659 = vmatprep.mubr.bf16.mxu0 %v2717_v32  ;;  %1700 = vmatprep.mubr.bf16.mxu1 %v2717_v32  ;;  %v2592_v53 = vld [vmem:[%s3103_s29 + $0x478] sm:$0xff] }
  0xc4   : > { %1630 = vmatpush1.bf16.msra.mxu0 %v2533_v55  ;;  %1671 = vmatpush1.bf16.msra.mxu1 %v2535_v0  ;;  %v2610_v55 = vcombine.high %v2569_v60, %v2573_v61  ;;  %v2612_v0 = vcombine.high %v2570_v62, %v2574_v63  ;;  %v2631_v61 = vcombine.low %v2588_v49, %v2592_v53 }
  0xc5   : > { %1631 = vmatprep.subr.bf16.mxu0 %v2542_v1  ;;  %1672 = vmatprep.subr.bf16.mxu1 %v2544_v2  ;;  %v2577_v1 = vld [vmem:[%s3103_s29 + $0x400] sm:$0xff] }
  0xc6   : > { %v2581_v2 = vld [vmem:[%s3103_s29 + $0x420] sm:$0xff] }
  0xc8   : > { %1632 = vmatpush1.bf16.msra.mxu0 %v2541_v8  ;;  %1673 = vmatpush1.bf16.msra.mxu1 %v2543_v9  ;;  %v2620_v8 = vcombine.high %v2578_v3, %v2582_v4  ;;  %v2589_v9 = vld [vmem:[%s3103_s29 + $0x460] sm:$0xff] }
  0xc9   : > { %1633 = vmatprep.subr.bf16.mxu0 %v2550_v10  ;;  %1674 = vmatprep.subr.bf16.mxu1 %v2552_v11  ;;  %v2586_v10 = vld [vmem:[%s3103_s29 + $0x448] sm:$0xff] }
  0xca   : > { %v2590_v11 = vld [vmem:[%s3103_s29 + $0x468] sm:$0xff] }
  0xcc   : > { %1634 = vmatpush1.bf16.msra.mxu0 %v2549_v19  ;;  %1675 = vmatpush1.bf16.msra.mxu1 %v2551_v21  ;;  %v2628_v21 = vcombine.high %v2586_v10, %v2590_v11 }
  0xcd   : > { %1635 = vmatprep.subr.bf16.mxu0 %v3188_v15  ;;  %1676 = vmatprep.subr.bf16.mxu1 %v3191_v16  ;;  %v2538_v15 = vcombine.high %v2495_v29, %v2499_v30  ;;  %v2503_v16 = vld [vmem:[%s3103_s29 + $0x310] sm:$0xff] }
  0xce   : > { %v2546_v40 = vcombine.high %v2503_v16, %v2507_v37  ;;  %v2545_v54 = vcombine.low %v2503_v16, %v2507_v37 }
  0xd0   : > { %1636 = vmatpush1.bf16.msra.mxu0 %v3184_v13  ;;  %1677 = vmatpush1.bf16.msra.mxu1 %v3194_v17  ;;  %v2537_v13 = vcombine.low %v2495_v29, %v2499_v30  ;;  %v2539_v17 = vcombine.low %v2496_v31, %v2500_v33  ;;  %v2634_v29 = vcombine.high %v2593_v22, %v2597_v23 }
  0xd1   : > { %1709 = vmatprep.subr.bf16.mxu0 %v2530_v27  ;;  %1750 = vmatprep.subr.bf16.mxu1 %v2532_v28  ;;  %v2627_v28 = vcombine.low %v2586_v10, %v2590_v11  ;;  %v2636_v30 = vcombine.high %v2594_v24, %v2598_v25  ;;  %v2633_v31 = vcombine.low %v2593_v22, %v2597_v23 }
  0xd2   : > { %v2635_v33 = vcombine.low %v2594_v24, %v2598_v25 }
  0xd3   : > { %2565 = vmatmul.mubr.msk.bf16.vlgmr.msra.gmra.mrb[16].mxu0 %vm745_vm2, %v3142_v26  ;;  %2566 = vmatmul.mubr.msk.bf16.vlgmr.msra.gmra.mrb[16].mxu1 %vm745_vm2, %v3142_v26 }
  0xd4   : > { %1710 = vmatpush1.bf16.msra.mxu0 %v2529_v34  ;;  %1751 = vmatpush1.bf16.msra.mxu1 %v2531_v35  ;;  %v2571_v34 = vld [vmem:[%s3103_s29 + $0x3d0] sm:$0xff] }
  0xd5   : > { %1711 = vmatprep.subr.bf16.mxu0 %v2538_v15  ;;  %1752 = vmatprep.subr.bf16.mxu1 %v2540_v36  ;;  %v2575_v35 = vld [vmem:[%s3103_s29 + $0x3f0] sm:$0xff]  ;;  %v2572_v15 = vld [vmem:[%s3103_s29 + $0x3d8] sm:$0xff] }
  0xd6   : > { %1741 = vmatprep.mubr.bf16.mxu0 %v2717_v32  ;;  %1782 = vmatprep.mubr.bf16.mxu1 %v2717_v32  ;;  %v2576_v36 = vld [vmem:[%s3103_s29 + $0x3f8] sm:$0xff]  ;;  %v2614_v16 = vcombine.high %v2571_v34, %v2575_v35 }
  0xd7   : > { %v2616_v37 = vcombine.high %v2572_v15, %v2576_v36 }
  0xd8   : > { %1712 = vmatpush1.bf16.msra.mxu0 %v2537_v13  ;;  %1753 = vmatpush1.bf16.msra.mxu1 %v2539_v17  ;;  %v2580_v13 = vld [vmem:[%s3103_s29 + $0x418] sm:$0xff] }
  0xd9   : > { %1713 = vmatprep.subr.bf16.mxu0 %v2546_v40  ;;  %1754 = vmatprep.subr.bf16.mxu1 %v2548_v45  ;;  %v2584_v17 = vld [vmem:[%s3103_s29 + $0x438] sm:$0xff]  ;;  %v2613_v40 = vcombine.low %v2571_v34, %v2575_v35  ;;  %v2615_v45 = vcombine.low %v2572_v15, %v2576_v36 }
  0xda   : > { %v2624_v46 = vcombine.high %v2580_v13, %v2584_v17 }
  0xdc   : > { %1714 = vmatpush1.bf16.msra.mxu0 %v2545_v54  ;;  %1755 = vmatpush1.bf16.msra.mxu1 %v2547_v56  ;;  %v2632_v56 = vcombine.high %v2588_v49, %v2592_v53 }
  0xdd   : > { %1715 = vmatprep.subr.bf16.mxu0 %v2554_v57  ;;  %1756 = vmatprep.subr.bf16.mxu1 %v2556_v58  ;;  %v2595_v57 = vld [vmem:[%s3103_s29 + $0x490] sm:$0xff] }
  0xde   : > { %v2599_v58 = vld [vmem:[%s3103_s29 + $0x4b0] sm:$0xff] }
  0xdf   : > { %v2638_v62 = vcombine.high %v2595_v57, %v2599_v58 }
  0xe0   : > { %1716 = vmatpush1.bf16.msra.mxu0 %v2553_v6  ;;  %1757 = vmatpush1.bf16.msra.mxu1 %v2555_v59  ;;  %v2596_v6 = vld [vmem:[%s3103_s29 + $0x498] sm:$0xff] }
  0xe1   : > { %1717 = vmatprep.subr.bf16.mxu0 %v3209_v42  ;;  %1758 = vmatprep.subr.bf16.mxu1 %v3212_v43  ;;  %v2618_v42 = vcombine.high %v2577_v1, %v2581_v2  ;;  %v2585_v43 = vld [vmem:[%s3103_s29 + $0x440] sm:$0xff]  ;;  %v2600_v59 = vld [vmem:[%s3103_s29 + $0x4b8] sm:$0xff] }
  0xe2   : > { %v2626_v19 = vcombine.high %v2585_v43, %v2589_v9  ;;  %v2625_v27 = vcombine.low %v2585_v43, %v2589_v9  ;;  %v2640_v63 = vcombine.high %v2596_v6, %v2600_v59 }
  0xe4   : > { %1718 = vmatpush1.bf16.msra.mxu0 %v3215_v44  ;;  %1759 = vmatpush1.bf16.msra.mxu1 %v3218_v47  ;;  %v2617_v44 = vcombine.low %v2577_v1, %v2581_v2  ;;  %v2619_v47 = vcombine.low %v2578_v3, %v2582_v4 }
  0xe5   : > { %2056 = vmatprep.subr.bf16.mxu0 %v2610_v55  ;;  %2097 = vmatprep.subr.bf16.mxu1 %v2612_v0  ;;  %v2637_v55 = vcombine.low %v2595_v57, %v2599_v58  ;;  %v2639_v0 = vcombine.low %v2596_v6, %v2600_v59 }
  0xe7   : > { %2567 = vmatmul.mubr.msk.bf16.vlgmr.msra.gmra.mrb[20].mxu0 %vm745_vm2, %v3142_v26  ;;  %2568 = vmatmul.mubr.msk.bf16.vlgmr.msra.gmra.mrb[20].mxu1 %vm745_vm2, %v3142_v26 }
  0xe8   : > { %2057 = vmatpush1.bf16.msra.mxu0 %v2609_v5  ;;  %2098 = vmatpush1.bf16.msra.mxu1 %v2611_v7 }
  0xe9   : > { %2058 = vmatprep.subr.bf16.mxu0 %v2618_v42  ;;  %2099 = vmatprep.subr.bf16.mxu1 %v2620_v8 }
  0xea   : > { %2088 = vmatprep.mubr.bf16.mxu0 %v2717_v32  ;;  %2129 = vmatprep.mubr.bf16.mxu1 %v2717_v32 }
  0xec   : > { %2059 = vmatpush1.bf16.msra.mxu0 %v2617_v44  ;;  %2100 = vmatpush1.bf16.msra.mxu1 %v2619_v47 }
  0xed   : > { %2060 = vmatprep.subr.bf16.mxu0 %v2626_v19  ;;  %2101 = vmatprep.subr.bf16.mxu1 %v2628_v21 }
  0xf0   : > { %2061 = vmatpush1.bf16.msra.mxu0 %v2625_v27  ;;  %2102 = vmatpush1.bf16.msra.mxu1 %v2627_v28 }
  0xf1   : > { %2062 = vmatprep.subr.bf16.mxu0 %v2634_v29  ;;  %2103 = vmatprep.subr.bf16.mxu1 %v2636_v30 }
  0xf4   : > { %2063 = vmatpush1.bf16.msra.mxu0 %v2633_v31  ;;  %2104 = vmatpush1.bf16.msra.mxu1 %v2635_v33 }
  0xf5   : > { %2064 = vmatprep.subr.bf16.mxu0 %v3252_v12  ;;  %2105 = vmatprep.subr.bf16.mxu1 %v3261_v20  ;;  %v2622_v12 = vcombine.high %v2579_v38, %v2583_v39  ;;  %v2587_v20 = vld [vmem:[%s3103_s29 + $0x450] sm:$0xff] }
  0xf6   : > { %v2630_v54 = vcombine.high %v2587_v20, %v2591_v41  ;;  %v2629_v60 = vcombine.low %v2587_v20, %v2591_v41 }
  0xf8   : > { %2065 = vmatpush1.bf16.msra.mxu0 %v3255_v14  ;;  %2106 = vmatpush1.bf16.msra.mxu1 %v3258_v18  ;;  %v2621_v14 = vcombine.low %v2579_v38, %v2583_v39  ;;  %v2623_v18 = vcombine.low %v2580_v13, %v2584_v17 }
  0xf9   : > { %2138 = vmatprep.subr.bf16.mxu0 %v2614_v16  ;;  %2179 = vmatprep.subr.bf16.mxu1 %v2616_v37 }
  0xfb   : > { %2649 = vmatmul.mubr.msk.bf16.vlgmr.msra.gmra.mrb[24].mxu0 %vm745_vm2, %v3142_v26  ;;  %2650 = vmatmul.mubr.msk.bf16.vlgmr.msra.gmra.mrb[24].mxu1 %vm745_vm2, %v3142_v26 }
  0xfc   : > { %2139 = vmatpush1.bf16.msra.mxu0 %v2613_v40  ;;  %2180 = vmatpush1.bf16.msra.mxu1 %v2615_v45 }
  0xfd   : > { %2140 = vmatprep.subr.bf16.mxu0 %v2622_v12  ;;  %2181 = vmatprep.subr.bf16.mxu1 %v2624_v46 }
  0xfe   : > { %2170 = vmatprep.mubr.bf16.mxu0 %v2717_v32  ;;  %2211 = vmatprep.mubr.bf16.mxu1 %v2717_v32 }
 0x100   : > { %2141 = vmatpush1.bf16.msra.mxu0 %v2621_v14  ;;  %2182 = vmatpush1.bf16.msra.mxu1 %v2623_v18 }
 0x101   : > { %2142 = vmatprep.subr.bf16.mxu0 %v2630_v54  ;;  %2183 = vmatprep.subr.bf16.mxu1 %v2632_v56 }
 0x104   : > { %2143 = vmatpush1.bf16.msra.mxu0 %v2629_v60  ;;  %2184 = vmatpush1.bf16.msra.mxu1 %v2631_v61 }
 0x105   : > { %2144 = vmatprep.subr.bf16.mxu0 %v2638_v62  ;;  %2185 = vmatprep.subr.bf16.mxu1 %v2640_v63 }
 0x108   : > { %2145 = vmatpush1.bf16.msra.mxu0 %v2637_v55  ;;  %2186 = vmatpush1.bf16.msra.mxu1 %v2639_v0 }
 0x109   : > { %2146 = vmatprep.subr.bf16.mxu0 %v3285_v50  ;;  %2187 = vmatprep.subr.bf16.mxu1 %v3288_v51 }
 0x10c   : > { %2147 = vmatpush1.bf16.msra.mxu0 %v3281_v48  ;;  %2188 = vmatpush1.bf16.msra.mxu1 %v3291_v52 }
 0x10f   : > { %2651 = vmatmul.mubr.msk.bf16.vlgmr.msra.gmra.mrb[28].mxu0 %vm745_vm2, %v3142_v26  ;;  %2652 = vmatmul.mubr.msk.bf16.vlgmr.msra.gmra.mrb[28].mxu1 %vm745_vm2, %v3142_v26 }
 0x156   : > { %v811_v32 = vpop.f32.mrb[0].mxu0  ;;  %v852_v1 = vpop.f32.mrb[0].mxu1 }
 0x157   : > { %v813_v2 = vpop.f32.mrb[1].mxu0  ;;  %v854_v3 = vpop.f32.mrb[1].mxu1 }
 0x158   : > { %v815_v4 = vpop.f32.mrb[2].mxu0  ;;  %v856_v5 = vpop.f32.mrb[2].mxu1 }
 0x159   : > { %v816_v7 = vpop.f32.mrb[3].mxu0  ;;  %v857_v50 = vpop.f32.mrb[3].mxu1 }
 0x16a   : > { %v893_v42 = vpop.f32.mrb[4].mxu0  ;;  %v934_v51 = vpop.f32.mrb[4].mxu1 }
 0x16b   : > { %v895_v8 = vpop.f32.mrb[5].mxu0  ;;  %v936_v48 = vpop.f32.mrb[5].mxu1 }
 0x16c   : > { %v897_v43 = vpop.f32.mrb[6].mxu0  ;;  %v938_v52 = vpop.f32.mrb[6].mxu1 }
 0x16d   : > { %v898_v9 = vpop.f32.mrb[7].mxu0  ;;  %v939_v10 = vpop.f32.mrb[7].mxu1 }
 0x17e   : > { %v1232_v11 = vpop.f32.mrb[8].mxu0  ;;  %v1273_v47 = vpop.f32.mrb[8].mxu1 }
 0x17f   : > { %v1362_v44 = vmax.f32 %v811_v32, %v1232_v11  ;;  %v1234_v26 = vpop.f32.mrb[9].mxu0  ;;  %v1364_v19 = vmax.f32 %v852_v1, %v1273_v47  ;;  %v1275_v22 = vpop.f32.mrb[9].mxu1 }
 0x180   : > { %v1363_v21 = vmax.f32 %v813_v2, %v1234_v26  ;;  %v1236_v23 = vpop.f32.mrb[10].mxu0  ;;  %v1365_v24 = vmax.f32 %v854_v3, %v1275_v22  ;;  %v1277_v25 = vpop.f32.mrb[10].mxu1 }
 0x181   : > { %v1237_v27 = vpop.f32.mrb[11].mxu0  ;;  %v1278_v28 = vpop.f32.mrb[11].mxu1 }
 0x182   : > { %v2232_v1 = vpop.permute.xlu0 %2231 }
 0x192   : > { %v1314_v29 = vpop.f32.mrb[12].mxu0  ;;  %v1355_v31 = vpop.f32.mrb[12].mxu1 }
 0x193   : > { %v1366_v30 = vmax.f32 %v893_v42, %v1314_v29  ;;  %v1316_v33 = vpop.f32.mrb[13].mxu0  ;;  %v1368_v34 = vmax.f32 %v934_v51, %v1355_v31  ;;  %v1357_v15 = vpop.f32.mrb[13].mxu1 }
 0x194   : > { %v1367_v35 = vmax.f32 %v895_v8, %v1316_v33  ;;  %v1318_v36 = vpop.f32.mrb[14].mxu0  ;;  %v1369_v16 = vmax.f32 %v936_v48, %v1357_v15  ;;  %v1359_v37 = vpop.f32.mrb[14].mxu1 }
 0x195   : > { %v1319_v38 = vpop.f32.mrb[15].mxu0  ;;  %v1360_v39 = vpop.f32.mrb[15].mxu1 }
 0x1a6   : > { %v1661_v13 = vpop.f32.mrb[16].mxu0  ;;  %v1702_v40 = vpop.f32.mrb[16].mxu1 }
 0x1a7   : > { %v1791_v17 = vmax.f32 %v1362_v44, %v1661_v13  ;;  %v1663_v45 = vpop.f32.mrb[17].mxu0  ;;  %v1793_v12 = vmax.f32 %v1364_v19, %v1702_v40  ;;  %v1704_v20 = vpop.f32.mrb[17].mxu1 }
 0x1a8   : > { %v1792_v46 = vmax.f32 %v1363_v21, %v1663_v45  ;;  %v1665_v41 = vpop.f32.mrb[18].mxu0  ;;  %v1794_v49 = vmax.f32 %v1365_v24, %v1704_v20  ;;  %v1706_v53 = vpop.f32.mrb[18].mxu1 }
 0x1a9   : > { %v1666_v14 = vpop.f32.mrb[19].mxu0  ;;  %v1707_v18 = vpop.f32.mrb[19].mxu1 }
 0x1ba   : > { %v1743_v54 = vpop.f32.mrb[20].mxu0  ;;  %v1784_v57 = vpop.f32.mrb[20].mxu1 }
 0x1bb   : > { %v1795_v56 = vmax.f32 %v1366_v30, %v1743_v54  ;;  %v1745_v58 = vpop.f32.mrb[21].mxu0  ;;  %v1797_v6 = vmax.f32 %v1368_v34, %v1784_v57  ;;  %v1786_v60 = vpop.f32.mrb[21].mxu1 }
 0x1bc   : > { %v1796_v59 = vmax.f32 %v1367_v35, %v1745_v58  ;;  %v1747_v61 = vpop.f32.mrb[22].mxu0  ;;  %v1798_v62 = vmax.f32 %v1369_v16, %v1786_v60  ;;  %v1788_v63 = vpop.f32.mrb[22].mxu1 }
 0x1bd   : > { %v1748_v55 = vpop.f32.mrb[23].mxu0  ;;  %v1789_v0 = vpop.f32.mrb[23].mxu1 }
 0x1ce   : > { %v2090_v32 = vpop.f32.mrb[24].mxu0  ;;  %v2131_v3 = vpop.f32.mrb[24].mxu1 }
 0x1cf   : > { %v2220_v2 = vmax.f32 %v1791_v17, %v2090_v32  ;;  %v2092_v4 = vpop.f32.mrb[25].mxu0  ;;  %v2222_v5 = vmax.f32 %v1793_v12, %v2131_v3  ;;  %v2133_v50 = vpop.f32.mrb[25].mxu1 }
 0x1d0   : > { %v2221_v7 = vmax.f32 %v1792_v46, %v2092_v4  ;;  %v2094_v42 = vpop.f32.mrb[26].mxu0  ;;  %v2223_v51 = vmax.f32 %v1794_v49, %v2133_v50  ;;  %v2135_v48 = vpop.f32.mrb[26].mxu1 }
 0x1d1   : > { %v2234_v8 = vadd.f32 %v2232_v1, %v2220_v2  ;;  %v2095_v43 = vpop.f32.mrb[27].mxu0  ;;  %v2236_v9 = vadd.f32 %v2232_v1, %v2222_v5  ;;  %v2136_v10 = vpop.f32.mrb[27].mxu1 }
 0x1d2   : > { %v2235_v52 = vadd.f32 %v2232_v1, %v2221_v7  ;;  %v2237_v11 = vadd.f32 %v2232_v1, %v2223_v51 }
 0x1d3   : > { %v2242_v44 = vmax.f32 %v2234_v8, 0.0  ;;  %v2244_v26 = vmax.f32 %v2236_v9, 0.0 }
 0x1d4   : > { %v2243_v47 = vmax.f32 %v2235_v52, 0.0  ;;  %v2245_v19 = vmax.f32 %v2237_v11, 0.0 }
 0x1d6   : > { %v2660_v21 = vpack.c.bf16 %v2243_v47, %v2242_v44  ;;  %v2661_v22 = vpack.c.bf16 %v2245_v19, %v2244_v26 }
 0x1d8   : > { %2282 = vst [vmem:[%s509_s11] sm:$0x77] %v2660_v21  ;;  %2283 = vst [vmem:[%s509_s11 + $0x8] sm:$0x77] %v2661_v22 }
 0x1e2   : > { %v2172_v23 = vpop.f32.mrb[28].mxu0  ;;  %v2213_v25 = vpop.f32.mrb[28].mxu1 }
 0x1e3   : > { %v2224_v24 = vmax.f32 %v1795_v56, %v2172_v23  ;;  %v2174_v27 = vpop.f32.mrb[29].mxu0  ;;  %v2226_v28 = vmax.f32 %v1797_v6, %v2213_v25  ;;  %v2215_v30 = vpop.f32.mrb[29].mxu1 }
 0x1e4   : > { %v2225_v29 = vmax.f32 %v1796_v59, %v2174_v27  ;;  %v2176_v31 = vpop.f32.mrb[30].mxu0  ;;  %v2227_v34 = vmax.f32 %v1798_v62, %v2215_v30  ;;  %v2217_v35 = vpop.f32.mrb[30].mxu1 }
 0x1e5   : > { %v2238_v33 = vadd.f32 %v2232_v1, %v2224_v24  ;;  %v2177_v15 = vpop.f32.mrb[31].mxu0  ;;  %v2240_v36 = vadd.f32 %v2232_v1, %v2226_v28  ;;  %v2218_v37 = vpop.f32.mrb[31].mxu1 }
 0x1e6   : > { %v2239_v16 = vadd.f32 %v2232_v1, %v2225_v29  ;;  %v2241_v39 = vadd.f32 %v2232_v1, %v2227_v34 }
 0x1e7   : > { %v2246_v38 = vmax.f32 %v2238_v33, 0.0  ;;  %v2248_v13 = vmax.f32 %v2240_v36, 0.0 }
 0x1e8   : > { %v2247_v17 = vmax.f32 %v2239_v16, 0.0  ;;  %v2249_v40 = vmax.f32 %v2241_v39, 0.0 }
 0x1ea   : > { %v2662_v45 = vpack.c.bf16 %v2247_v17, %v2246_v38  ;;  %v2663_v12 = vpack.c.bf16 %v2249_v40, %v2248_v13 }
 0x1ec   : > { %2284 = vst [vmem:[%s509_s11 + $0x10] sm:$0x77] %v2662_v45  ;;  %2285 = vst [vmem:[%s509_s11 + $0x18] sm:$0x77] %v2663_v12 }
 0x1ed PF: > { %p10_p9 = scmp.ge.s32.totalorder %s2756_s16, 4   ;;  %s3447_s12 = smov %s2711_s13 }
 0x1ee   : > { %s3448_s13 = smov %s2765_s19  ;;  %s3449_s14 = smov %s2756_s16 }
 0x1ef   :  { %12 = sbr.rel (!%p10_p9) target bundleno = 2 (0x2), region = 93 }

// kernel: net_forward.4
= control target key start
LH: loop header
LB: loop body
LE: loop exit
PB: predicated region body
PF: predicated region fallthrough
CT: control target
= control target key end

     0   :  { %v1008_v1 = vmov 0   ;;  %vm140_vm0 = vcmask 179200   ;;  %vm144_vm1 = vcmask 1042432   ;;  %s1293_s0 = inlined_call_operand.vmem [shape: bf16[4,150,256], index: 0, kind: input, shape index: {}]   ;;  %s1294_s1 = inlined_call_operand.vmem [shape: bf16[16,150], index: 1, kind: input, shape index: {}]   ;;  %s1295_s2 = inlined_call_operand.vmem [shape: f32[16,1], index: 2, kind: input, shape index: {}]   ;;  %s1296_s3 = inlined_call_operand.vmem [shape: bf16[16,256], index: 3, kind: output, shape index: {}]  }
   0x1   :  { %v889_v0 = vld [vmem:[%s1293_s0 + $0x4] ss:$8 sps:$4 sm:$0xff]   ;;  %888 = vset.pattern.permute.xlu0 %v1008_v1  ;;  %v893_v3 = vld [vmem:[%s1293_s0] ss:$8 sps:$4 sm:$0xff]   ;;  %v895_v5 = vld [vmem:[%s1293_s0 + $0x14] ss:$8 sps:$4 sm:$0xff]  }
   0x2   :  { %v891_v2 = vld [vmem:[%s1293_s0 + $0x9c] ss:$8 sps:$4 sm:$0xff]   ;;  %151 = vmatprep.subr.bf16.mxu0 %v889_v0  ;;  %v894_v4 = vld [vmem:[%s1293_s0 + $0x98] ss:$8 sps:$4 sm:$0xff]   ;;  %v897_v6 = vld [vmem:[%s1293_s0 + $0xac] ss:$8 sps:$4 sm:$0xff]  }
   0x3   :  { %315 = vmatprep.subr.bf16.mxu1 %v891_v2  ;;  %152 = vmatpush1.bf16.msra.mxu0 %v893_v3  ;;  %v899_v7 = vld [vmem:[%s1293_s0 + $0x10] ss:$8 sps:$4 sm:$0xff]   ;;  %v901_v9 = vld [vmem:[%s1293_s0 + $0x24] ss:$8 sps:$4 sm:$0xff]   ;;  %v905_v11 = vld [vmem:[%s1293_s0 + $0x20] ss:$8 sps:$4 sm:$0xff]  }
   0x4   :  { %316 = vmatpush1.bf16.msra.mxu1 %v894_v4  ;;  %153 = vmatprep.subr.bf16.mxu0 %v895_v5  ;;  %v900_v8 = vld [vmem:[%s1293_s0 + $0xa8] ss:$8 sps:$4 sm:$0xff]   ;;  %v903_v10 = vld [vmem:[%s1293_s0 + $0xbc] ss:$8 sps:$4 sm:$0xff]   ;;  %v906_v12 = vld [vmem:[%s1293_s0 + $0xb8] ss:$8 sps:$4 sm:$0xff]  }
   0x5   :  { %317 = vmatprep.subr.bf16.mxu1 %v897_v6  ;;  %v907_v13 = vld [vmem:[%s1293_s0 + $0x34] ss:$8 sps:$4 sm:$0xff]   ;;  %v911_v15 = vld [vmem:[%s1293_s0 + $0x30] ss:$8 sps:$4 sm:$0xff]   ;;  %v913_v17 = vld [vmem:[%s1293_s0 + $0x44] ss:$8 sps:$4 sm:$0xff]  }
   0x6   :  { %v909_v14 = vld [vmem:[%s1293_s0 + $0xcc] ss:$8 sps:$4 sm:$0xff]   ;;  %v912_v16 = vld [vmem:[%s1293_s0 + $0xc8] ss:$8 sps:$4 sm:$0xff]   ;;  %v915_v18 = vld [vmem:[%s1293_s0 + $0xdc] ss:$8 sps:$4 sm:$0xff]  }
   0x7   :  { %154 = vmatpush1.bf16.msra.mxu0 %v899_v7  ;;  %v917_v19 = vld [vmem:[%s1293_s0 + $0x40] ss:$8 sps:$4 sm:$0xff]   ;;  %v919_v21 = vld [vmem:[%s1293_s0 + $0x54] ss:$8 sps:$4 sm:$0xff]   ;;  %v923_v23 = vld [vmem:[%s1293_s0 + $0x50] ss:$8 sps:$4 sm:$0xff]  }
   0x8   :  { %318 = vmatpush1.bf16.msra.mxu1 %v900_v8  ;;  %155 = vmatprep.subr.bf16.mxu0 %v901_v9  ;;  %v918_v20 = vld [vmem:[%s1293_s0 + $0xd8] ss:$8 sps:$4 sm:$0xff]   ;;  %v921_v22 = vld [vmem:[%s1293_s0 + $0xec] ss:$8 sps:$4 sm:$0xff]   ;;  %v924_v24 = vld [vmem:[%s1293_s0 + $0xe8] ss:$8 sps:$4 sm:$0xff]  }
   0x9   :  { %319 = vmatprep.subr.bf16.mxu1 %v903_v10  ;;  %v925_v25 = vld [vmem:[%s1293_s0 + $0x64] ss:$8 sps:$4 sm:$0xff]   ;;  %v929_v27 = vld [vmem:[%s1293_s0 + $0x60] ss:$8 sps:$4 sm:$0xff]   ;;  %v931_v29 = vld [vmem:[%s1293_s0 + $0x74] ss:$8 sps:$4 sm:$0xff]  }
   0xa   :  { %v927_v26 = vld [vmem:[%s1293_s0 + $0xfc] ss:$8 sps:$4 sm:$0xff]   ;;  %v930_v28 = vld [vmem:[%s1293_s0 + $0xf8] ss:$8 sps:$4 sm:$0xff]   ;;  %v933_v30 = vld [vmem:[%s1293_s0 + $0x10c] ss:$8 sps:$4 sm:$0xff]  }
   0xb   :  { %156 = vmatpush1.bf16.msra.mxu0 %v905_v11  ;;  %v947_v31 = vld [vmem:[%s1294_s1 + $0x4] ss:$8 sps:$4 sm:$0xff]   ;;  %v935_v32 = vld [vmem:[%s1293_s0 + $0x70] ss:$8 sps:$4 sm:$0xff]   ;;  %v941_v38 = vld [vmem:[%s1293_s0 + $0x80] ss:$8 sps:$4 sm:$0xff]  }
   0xc   :  { %320 = vmatpush1.bf16.msra.mxu1 %v906_v12  ;;  %157 = vmatprep.subr.bf16.mxu0 %v907_v13  ;;  %v936_v33 = vld [vmem:[%s1293_s0 + $0x108] ss:$8 sps:$4 sm:$0xff]   ;;  %v937_v34 = vld [vmem:[%s1293_s0 + $0x84] ss:$8 sps:$4 sm:$0xff]   ;;  %v942_v39 = vld [vmem:[%s1293_s0 + $0x118] ss:$8 sps:$4 sm:$0xff]  }
   0xd   :  { %321 = vmatprep.subr.bf16.mxu1 %v909_v14  ;;  %759 = vmatprep.mubr.msk.bf16.mxu0 %vm140_vm0, %v947_v31  ;;  %v939_v35 = vld [vmem:[%s1293_s0 + $0x11c] ss:$8 sps:$4 sm:$0xff]   ;;  %v35_v36 = vld [vmem:[%s1293_s0 + $0x90] sm:$0x77]  ;;  %v778_v37 = vld [vmem:[%s1293_s0 + $0x128] sm:$0x77] }
   0xe   :  { %800 = vmatprep.mubr.msk.bf16.mxu1 %vm140_vm0, %v947_v31  ;;  %v756_v40 = vcombine.low %v35_v36, %v35_v36  ;;  %v757_v41 = vcombine.high %v35_v36, %v35_v36  ;;  %v798_v42 = vcombine.high %v778_v37, %v778_v37  ;;  %v797_v43 = vcombine.low %v778_v37, %v778_v37  ;;  %v952_v46 = vld [vmem:[%s1293_s0 + $0x134] ss:$8 sps:$4 sm:$0xff]   ;;  %v1161_v48 = vld [vmem:[%s1294_s1] ss:$8 sps:$4 sm:$0xff]   ;;  %v950_v49 = vld [vmem:[%s1293_s0 + $0x130] ss:$8 sps:$4 sm:$0xff]  }
   0xf   :  { %158 = vmatpush1.bf16.msra.mxu0 %v911_v15  ;;  %v955_v47 = vld [vmem:[%s1293_s0 + $0x1cc] ss:$8 sps:$4 sm:$0xff]   ;;  %v953_v50 = vld [vmem:[%s1293_s0 + $0x1c8] ss:$8 sps:$4 sm:$0xff]   ;;  %v961_v52 = vld [vmem:[%s1293_s0 + $0x1dc] ss:$8 sps:$4 sm:$0xff]  }
  0x10   :  { %322 = vmatpush1.bf16.msra.mxu1 %v912_v16  ;;  %159 = vmatprep.subr.bf16.mxu0 %v913_v17  ;;  %v146_v44 = vsel %vm144_vm1, %v756_v40, 0  ;;  %v310_v45 = vsel %vm144_vm1, %v797_v43, 0  ;;  %v958_v51 = vld [vmem:[%s1293_s0 + $0x144] ss:$8 sps:$4 sm:$0xff]   ;;  %v956_v53 = vld [vmem:[%s1293_s0 + $0x140] ss:$8 sps:$4 sm:$0xff]  }
  0x11   :  { %323 = vmatprep.subr.bf16.mxu1 %v915_v18  ;;  %v959_v54 = vld [vmem:[%s1293_s0 + $0x1d8] ss:$8 sps:$4 sm:$0xff]   ;;  %v964_v55 = vld [vmem:[%s1293_s0 + $0x154] ss:$8 sps:$4 sm:$0xff]   ;;  %v965_v58 = vld [vmem:[%s1293_s0 + $0x1e8] ss:$8 sps:$4 sm:$0xff]  }
  0x12   :  { %v967_v56 = vld [vmem:[%s1293_s0 + $0x1ec] ss:$8 sps:$4 sm:$0xff]   ;;  %v962_v57 = vld [vmem:[%s1293_s0 + $0x150] ss:$8 sps:$4 sm:$0xff]   ;;  %v973_v60 = vld [vmem:[%s1293_s0 + $0x1fc] ss:$8 sps:$4 sm:$0xff]  }
  0x13   :  { %160 = vmatpush1.bf16.msra.mxu0 %v917_v19  ;;  %v970_v59 = vld [vmem:[%s1293_s0 + $0x164] ss:$8 sps:$4 sm:$0xff]   ;;  %v968_v62 = vld [vmem:[%s1293_s0 + $0x160] ss:$8 sps:$4 sm:$0xff]   ;;  %v976_v1 = vld [vmem:[%s1293_s0 + $0x174] ss:$8 sps:$4 sm:$0xff]  }
  0x14   :  { %324 = vmatpush1.bf16.msra.mxu1 %v918_v20  ;;  %161 = vmatprep.subr.bf16.mxu0 %v919_v21  ;;  %v698_v61 = vld [vmem:[%s1295_s2] sm:$0xff]  ;;  %v699_v0 = vld [vmem:[%s1295_s2 + $0x8] sm:$0xff]  ;;  %v974_v3 = vld [vmem:[%s1293_s0 + $0x170] ss:$8 sps:$4 sm:$0xff]  }
  0x15   :  { %325 = vmatprep.subr.bf16.mxu1 %v921_v22  ;;  %702 = vperm.xlu0 %888, %v698_v61   ;;  %v971_v63 = vld [vmem:[%s1293_s0 + $0x1f8] ss:$8 sps:$4 sm:$0xff]   ;;  %v979_v2 = vld [vmem:[%s1293_s0 + $0x20c] ss:$8 sps:$4 sm:$0xff]   ;;  %v977_v4 = vld [vmem:[%s1293_s0 + $0x208] ss:$8 sps:$4 sm:$0xff]  }
  0x16   :  { %v982_v5 = vld [vmem:[%s1293_s0 + $0x184] ss:$8 sps:$4 sm:$0xff]   ;;  %v980_v7 = vld [vmem:[%s1293_s0 + $0x180] ss:$8 sps:$4 sm:$0xff]   ;;  %v988_v9 = vld [vmem:[%s1293_s0 + $0x194] ss:$8 sps:$4 sm:$0xff]  }
  0x17   :  { %162 = vmatpush1.bf16.msra.mxu0 %v923_v23  ;;  %v985_v6 = vld [vmem:[%s1293_s0 + $0x21c] ss:$8 sps:$4 sm:$0xff]   ;;  %v983_v8 = vld [vmem:[%s1293_s0 + $0x218] ss:$8 sps:$4 sm:$0xff]   ;;  %v991_v10 = vld [vmem:[%s1293_s0 + $0x22c] ss:$8 sps:$4 sm:$0xff]  }
  0x18   :  { %326 = vmatpush1.bf16.msra.mxu1 %v924_v24  ;;  %163 = vmatprep.subr.bf16.mxu0 %v925_v25  ;;  %v986_v11 = vld [vmem:[%s1293_s0 + $0x190] ss:$8 sps:$4 sm:$0xff]   ;;  %v994_v13 = vld [vmem:[%s1293_s0 + $0x1a4] ss:$8 sps:$4 sm:$0xff]   ;;  %v992_v15 = vld [vmem:[%s1293_s0 + $0x1a0] ss:$8 sps:$4 sm:$0xff]  }
  0x19   :  { %327 = vmatprep.subr.bf16.mxu1 %v927_v26  ;;  %707 = vperm.xlu0 %888, %v699_v0   ;;  %v989_v12 = vld [vmem:[%s1293_s0 + $0x228] ss:$8 sps:$4 sm:$0xff]   ;;  %v997_v14 = vld [vmem:[%s1293_s0 + $0x23c] ss:$8 sps:$4 sm:$0xff]   ;;  %v995_v16 = vld [vmem:[%s1293_s0 + $0x238] ss:$8 sps:$4 sm:$0xff]  }
  0x1a   :  { %v1000_v17 = vld [vmem:[%s1293_s0 + $0x1b4] ss:$8 sps:$4 sm:$0xff]   ;;  %v819_v19 = vld [vmem:[%s1293_s0 + $0x1c0] sm:$0x77]  ;;  %v998_v21 = vld [vmem:[%s1293_s0 + $0x1b0] ss:$8 sps:$4 sm:$0xff]  }
  0x1b   :  { %164 = vmatpush1.bf16.msra.mxu0 %v929_v27  ;;  %v1003_v18 = vld [vmem:[%s1293_s0 + $0x24c] ss:$8 sps:$4 sm:$0xff]   ;;  %v860_v20 = vld [vmem:[%s1293_s0 + $0x258] sm:$0x77]  ;;  %v1001_v22 = vld [vmem:[%s1293_s0 + $0x248] ss:$8 sps:$4 sm:$0xff]   ;;  %v839_v23 = vcombine.high %v819_v19, %v819_v19  ;;  %v838_v25 = vcombine.low %v819_v19, %v819_v19 }
  0x1c   :  { %328 = vmatpush1.bf16.msra.mxu1 %v930_v28  ;;  %165 = vmatprep.subr.bf16.mxu0 %v931_v29  ;;  %v880_v24 = vcombine.high %v860_v20, %v860_v20  ;;  %v879_v26 = vcombine.low %v860_v20, %v860_v20 }
  0x1d   :  { %329 = vmatprep.subr.bf16.mxu1 %v933_v30  ;;  %v478_v27 = vsel %vm144_vm1, %v838_v25, 0 }
  0x1e   :  { %v646_v28 = vsel %vm144_vm1, %v879_v26, 0 }
  0x1f   :  { %166 = vmatpush1.bf16.msra.mxu0 %v935_v32 }
  0x20   :  { %330 = vmatpush1.bf16.msra.mxu1 %v936_v33  ;;  %167 = vmatprep.subr.bf16.mxu0 %v937_v34 }
  0x21   :  { %331 = vmatprep.subr.bf16.mxu1 %v939_v35 }
  0x23   :  { %168 = vmatpush1.bf16.msra.mxu0 %v941_v38 }
  0x24   :  { %332 = vmatpush1.bf16.msra.mxu1 %v942_v39  ;;  %758 = vmatprep.subr.msk.bf16.mxu0 %vm144_vm1, %v757_v41 }
  0x25   :  { %799 = vmatprep.subr.msk.bf16.mxu1 %vm144_vm1, %v798_v42 }
  0x27   :  { %170 = vmatpush1.bf16.msra.mxu0 %v146_v44 }
  0x28   :  { %334 = vmatpush1.bf16.msra.mxu1 %v310_v45  ;;  %483 = vmatprep.subr.bf16.mxu0 %v952_v46 }
  0x29   :  { %651 = vmatprep.subr.bf16.mxu1 %v955_v47 }
  0x2a   :  { %184 = vmatmul.mubr.bf16.vlgmr.msra.gmra.mrb[0].mxu0 %v1161_v48 }
  0x2b   :  { %348 = vmatmul.mubr.bf16.vlgmr.msra.gmra.mrb[0].mxu1 %v1161_v48  ;;  %484 = vmatpush1.bf16.msra.mxu0 %v950_v49 }
  0x2c   :  { %652 = vmatpush1.bf16.msra.mxu1 %v953_v50  ;;  %485 = vmatprep.subr.bf16.mxu0 %v958_v51 }
  0x2d   :  { %653 = vmatprep.subr.bf16.mxu1 %v961_v52  ;;  %841 = vmatprep.mubr.msk.bf16.mxu0 %vm140_vm0, %v947_v31 }
  0x2e   :  { %882 = vmatprep.mubr.msk.bf16.mxu1 %vm140_vm0, %v947_v31 }
  0x2f   :  { %486 = vmatpush1.bf16.msra.mxu0 %v956_v53 }
  0x30   :  { %654 = vmatpush1.bf16.msra.mxu1 %v959_v54  ;;  %487 = vmatprep.subr.bf16.mxu0 %v964_v55 }
  0x31   :  { %655 = vmatprep.subr.bf16.mxu1 %v967_v56 }
  0x33   :  { %488 = vmatpush1.bf16.msra.mxu0 %v962_v57 }
  0x34   :  { %656 = vmatpush1.bf16.msra.mxu1 %v965_v58  ;;  %489 = vmatprep.subr.bf16.mxu0 %v970_v59 }
  0x35   :  { %657 = vmatprep.subr.bf16.mxu1 %v973_v60 }
  0x37   :  { %490 = vmatpush1.bf16.msra.mxu0 %v968_v62 }
  0x38   :  { %658 = vmatpush1.bf16.msra.mxu1 %v971_v63  ;;  %491 = vmatprep.subr.bf16.mxu0 %v976_v1 }
  0x39   :  { %659 = vmatprep.subr.bf16.mxu1 %v979_v2 }
  0x3b   :  { %492 = vmatpush1.bf16.msra.mxu0 %v974_v3 }
  0x3c   :  { %660 = vmatpush1.bf16.msra.mxu1 %v977_v4  ;;  %493 = vmatprep.subr.bf16.mxu0 %v982_v5 }
  0x3d   :  { %661 = vmatprep.subr.bf16.mxu1 %v985_v6 }
  0x3f   :  { %494 = vmatpush1.bf16.msra.mxu0 %v980_v7 }
  0x40   :  { %662 = vmatpush1.bf16.msra.mxu1 %v983_v8  ;;  %495 = vmatprep.subr.bf16.mxu0 %v988_v9 }
  0x41   :  { %663 = vmatprep.subr.bf16.mxu1 %v991_v10 }
  0x43   :  { %496 = vmatpush1.bf16.msra.mxu0 %v986_v11 }
  0x44   :  { %664 = vmatpush1.bf16.msra.mxu1 %v989_v12  ;;  %497 = vmatprep.subr.bf16.mxu0 %v994_v13 }
  0x45   :  { %665 = vmatprep.subr.bf16.mxu1 %v997_v14 }
  0x47   :  { %498 = vmatpush1.bf16.msra.mxu0 %v992_v15 }
  0x48   :  { %666 = vmatpush1.bf16.msra.mxu1 %v995_v16  ;;  %499 = vmatprep.subr.bf16.mxu0 %v1000_v17 }
  0x49   :  { %667 = vmatprep.subr.bf16.mxu1 %v1003_v18 }
  0x4b   :  { %500 = vmatpush1.bf16.msra.mxu0 %v998_v21 }
  0x4c   :  { %668 = vmatpush1.bf16.msra.mxu1 %v1001_v22  ;;  %840 = vmatprep.subr.msk.bf16.mxu0 %vm144_vm1, %v839_v23 }
  0x4d   :  { %881 = vmatprep.subr.msk.bf16.mxu1 %vm144_vm1, %v880_v24 }
  0x4f   :  { %502 = vmatpush1.bf16.msra.mxu0 %v478_v27 }
  0x50   :  { %670 = vmatpush1.bf16.msra.mxu1 %v646_v28 }
  0x52   :  { %516 = vmatmul.mubr.bf16.vlgmr.msra.gmra.mrb[4].mxu0 %v1161_v48 }
  0x53   :  { %684 = vmatmul.mubr.bf16.vlgmr.msra.gmra.mrb[4].mxu1 %v1161_v48 }
  0x94   :  { %v703_v41 = vpop.permute.xlu0 %702 }
  0x98   :  { %v708_v59 = vpop.permute.xlu0 %707 }
  0xfd   :  { %v185_v29 = vpop.f32.mrb[0].mxu0 }
  0xfe   :  { %v349_v30 = vpop.f32.mrb[0].mxu1  ;;  %v187_v32 = vpop.f32.mrb[1].mxu0 }
  0xff   :  { %v358_v31 = vmax.f32 %v185_v29, %v349_v30  ;;  %v351_v33 = vpop.f32.mrb[1].mxu1  ;;  %v189_v35 = vpop.f32.mrb[2].mxu0 }
 0x100   :  { %v359_v34 = vmax.f32 %v187_v32, %v351_v33  ;;  %v353_v36 = vpop.f32.mrb[2].mxu1  ;;  %v191_v38 = vpop.f32.mrb[3].mxu0 }
 0x101   :  { %v360_v37 = vmax.f32 %v189_v35, %v353_v36  ;;  %v355_v39 = vpop.f32.mrb[3].mxu1 }
 0x102   :  { %v361_v40 = vmax.f32 %v191_v38, %v355_v39 }
 0x125   :  { %v517_v42 = vpop.f32.mrb[4].mxu0 }
 0x126   :  { %v685_v43 = vpop.f32.mrb[4].mxu1  ;;  %v526_v44 = vmax.f32 %v358_v31, %v517_v42  ;;  %v519_v45 = vpop.f32.mrb[5].mxu0 }
 0x127   :  { %v687_v46 = vpop.f32.mrb[5].mxu1  ;;  %v527_v47 = vmax.f32 %v359_v34, %v519_v45  ;;  %v521_v48 = vpop.f32.mrb[6].mxu0 }
 0x128   :  { %v689_v49 = vpop.f32.mrb[6].mxu1  ;;  %v694_v50 = vmax.f32 %v526_v44, %v685_v43  ;;  %v528_v51 = vmax.f32 %v360_v37, %v521_v48  ;;  %v523_v52 = vpop.f32.mrb[7].mxu0 }
 0x129   :  { %v691_v53 = vpop.f32.mrb[7].mxu1  ;;  %v695_v54 = vmax.f32 %v527_v47, %v687_v46  ;;  %v529_v55 = vmax.f32 %v361_v40, %v523_v52 }
 0x12a   :  { %v710_v56 = vadd.f32 %v703_v41, %v694_v50  ;;  %v696_v57 = vmax.f32 %v528_v51, %v689_v49 }
 0x12b   :  { %v711_v58 = vadd.f32 %v703_v41, %v695_v54  ;;  %v697_v60 = vmax.f32 %v529_v55, %v691_v53 }
 0x12c   :  { %v714_v61 = vmax.f32 %v710_v56, 0.0  ;;  %v712_v62 = vadd.f32 %v708_v59, %v696_v57 }
 0x12d   :  { %v715_v63 = vmax.f32 %v711_v58, 0.0  ;;  %v713_v0 = vadd.f32 %v708_v59, %v697_v60 }
 0x12e   :  { %v716_v1 = vmax.f32 %v712_v62, 0.0 }
 0x12f   :  { %v885_v2 = vpack.c.bf16 %v715_v63, %v714_v61  ;;  %v717_v3 = vmax.f32 %v713_v0, 0.0 }
 0x131   :  { %730 = vst [vmem:[%s1296_s3] sm:$0xff] %v885_v2  ;;  %v886_v4 = vpack.c.bf16 %v717_v3, %v716_v1 }
 0x133   :  { %731 = vst [vmem:[%s1296_s3 + $0x8] sm:$0xff] %v886_v4 }

// kernel: net_forward.5
= control target key start
LH: loop header
LB: loop body
LE: loop exit
PB: predicated region body
PF: predicated region fallthrough
CT: control target
= control target key end

     0   :  { %v762_v1 = vmov 0   ;;  %vm250_vm0 = vcmask 130048   ;;  %v763_v32 = vmov 0.0   ;;  %s975_s0 = inlined_call_operand.vmem [shape: bf16[8,400], index: 0, kind: input, shape index: {}]   ;;  %s976_s1 = inlined_call_operand.vmem [shape: bf16[400,120], index: 1, kind: input, shape index: {}]   ;;  %s977_s2 = inlined_call_operand.vmem [shape: f32[1,120], index: 2, kind: input, shape index: {}]   ;;  %s978_s3 = inlined_call_operand.vmem [shape: bf16[120,84], index: 3, kind: input, shape index: {}]   ;;  %s979_s4 = inlined_call_operand.vmem [shape: f32[1,84], index: 4, kind: input, shape index: {}]   ;;  %s980_s5 = inlined_call_operand.vmem [shape: bf16[84,10], index: 5, kind: input, shape index: {}]   ;;  %s981_s6 = inlined_call_operand.vmem [shape: f32[1,10], index: 6, kind: input, shape index: {}]   ;;  %s982_s7 = inlined_call_operand.hbm [shape: f32[8,10], index: 7, kind: output, shape index: {}]  }
   0x1   :  { %v695_v0 = vld [vmem:[%s976_s1 + $0x40] sm:$0xff]   ;;  %294 = vmatprep.subr.bf16.mxu1 %v762_v1  ;;  %v698_v4 = vld [vmem:[%s976_s1 + $0x48] sm:$0xff]   ;;  %v701_v7 = vld [vmem:[%s976_s1 + $0x50] sm:$0xff]  }
   0x2   :  { %v696_v2 = vld [vmem:[%s976_s1 + $0x80] sm:$0xff]   ;;  %617 = vmatprep.subr.bf16.mxu0 %v695_v0  ;;  %v699_v5 = vld [vmem:[%s976_s1 + $0x88] sm:$0xff]   ;;  %v702_v8 = vld [vmem:[%s976_s1 + $0x90] sm:$0xff]  }
   0x3   :  { %v697_v3 = vld [vmem:[%s976_s1] sm:$0xff]   ;;  %295 = vmatpush1.bf16.msra.mxu1 %v696_v2  ;;  %v700_v6 = vld [vmem:[%s976_s1 + $0x8] sm:$0xff]   ;;  %v703_v9 = vld [vmem:[%s976_s1 + $0x10] sm:$0xff]  }
   0x4   :  { %618 = vmatpush3.bf16.msra.mxu0 %v697_v3  ;;  %296 = vmatprep.subr.bf16.mxu1 %v762_v1  ;;  %v704_v10 = vld [vmem:[%s976_s1 + $0x58] sm:$0xff]   ;;  %v707_v13 = vld [vmem:[%s976_s1 + $0x60] sm:$0xff]   ;;  %v710_v16 = vld [vmem:[%s976_s1 + $0x68] sm:$0xff]  }
   0x5   :  { %619 = vmatprep.subr.bf16.mxu0 %v698_v4  ;;  %v705_v11 = vld [vmem:[%s976_s1 + $0x98] sm:$0xff]   ;;  %v708_v14 = vld [vmem:[%s976_s1 + $0xa0] sm:$0xff]   ;;  %v711_v17 = vld [vmem:[%s976_s1 + $0xa8] sm:$0xff]  }
   0x6   :  { %v706_v12 = vld [vmem:[%s976_s1 + $0x18] sm:$0xff]   ;;  %v709_v15 = vld [vmem:[%s976_s1 + $0x20] sm:$0xff]   ;;  %v712_v18 = vld [vmem:[%s976_s1 + $0x28] sm:$0xff]  }
   0x7   :  { %297 = vmatpush1.bf16.msra.mxu1 %v699_v5  ;;  %v713_v19 = vld [vmem:[%s976_s1 + $0x70] sm:$0xff]   ;;  %v28_v22 = vld [vmem:[%s975_s0] sm:$0xff]  ;;  %v716_v23 = vld [vmem:[%s976_s1 + $0x78] sm:$0xff]  }
   0x8   :  { %620 = vmatpush3.bf16.msra.mxu0 %v700_v6  ;;  %298 = vmatprep.subr.bf16.mxu1 %v762_v1  ;;  %v714_v20 = vld [vmem:[%s976_s1 + $0xb0] sm:$0xff]   ;;  %v570_v24 = vcombine.high %v28_v22, %v28_v22  ;;  %v29_v25 = vld [vmem:[%s975_s0 + $0x8] sm:$0xff]  ;;  %v717_v27 = vld [vmem:[%s976_s1 + $0xb8] sm:$0xff]   ;;  %v569_v31 = vcombine.low %v28_v22, %v28_v22 }
   0x9   :  { %621 = vmatprep.subr.bf16.mxu0 %v701_v7  ;;  %v715_v21 = vld [vmem:[%s976_s1 + $0x30] sm:$0xff]   ;;  %v572_v26 = vcombine.high %v29_v25, %v29_v25  ;;  %v718_v28 = vld [vmem:[%s976_s1 + $0x38] sm:$0xff]   ;;  %v721_v29 = vld [vmem:[%s976_s1 + $0xc0] sm:$0xff]   ;;  %v571_v33 = vcombine.low %v29_v25, %v29_v25 }
   0xa   :  { %286 = vmatprep.mubr.bf16.mxu0 %v570_v24  ;;  %v724_v30 = vld [vmem:[%s978_s3] sm:$0xff]   ;;  %v725_v34 = vld [vmem:[%s978_s3 + $0x8] sm:$0xff]  }
   0xb   :  { %299 = vmatpush1.bf16.msra.mxu1 %v702_v8  ;;  %598 = vmatprep.mubr.msk.bf16.mxu1 %vm250_vm0, %v572_v26 }
   0xc   :  { %622 = vmatpush3.bf16.msra.mxu0 %v703_v9  ;;  %300 = vmatprep.subr.bf16.mxu1 %v762_v1 }
   0xd   :  { %623 = vmatprep.subr.bf16.mxu0 %v704_v10 }
   0xf   :  { %301 = vmatpush1.bf16.msra.mxu1 %v705_v11 }
  0x10   :  { %624 = vmatpush3.bf16.msra.mxu0 %v706_v12  ;;  %302 = vmatprep.subr.bf16.mxu1 %v762_v1 }
  0x11   :  { %625 = vmatprep.subr.bf16.mxu0 %v707_v13 }
  0x13   :  { %303 = vmatpush1.bf16.msra.mxu1 %v708_v14 }
  0x14   :  { %626 = vmatpush3.bf16.msra.mxu0 %v709_v15  ;;  %304 = vmatprep.subr.bf16.mxu1 %v762_v1 }
  0x15   :  { %627 = vmatprep.subr.bf16.mxu0 %v710_v16 }
  0x17   :  { %305 = vmatpush1.bf16.msra.mxu1 %v711_v17 }
  0x18   :  { %628 = vmatpush3.bf16.msra.mxu0 %v712_v18  ;;  %306 = vmatprep.subr.bf16.mxu1 %v762_v1 }
  0x19   :  { %629 = vmatprep.subr.bf16.mxu0 %v713_v19 }
  0x1b   :  { %307 = vmatpush1.bf16.msra.mxu1 %v714_v20 }
  0x1c   :  { %630 = vmatpush3.bf16.msra.mxu0 %v715_v21  ;;  %308 = vmatprep.subr.bf16.mxu1 %v762_v1 }
  0x1d   :  { %631 = vmatprep.subr.bf16.mxu0 %v716_v23 }
  0x1f   :  { %309 = vmatpush1.bf16.msra.mxu1 %v717_v27 }
  0x20   :  { %632 = vmatpush3.bf16.msra.mxu0 %v718_v28  ;;  %310 = vmatprep.subr.bf16.mxu1 %v762_v1 }
  0x21   :  { %655 = vmatprep.subr.bf16.mxu0 %v763_v32 }
  0x23   :  { %287 = vmatmul.mubr.bf16.vlgmr.msra.gmra.mrb[0].mxu0 %v569_v31  ;;  %311 = vmatpush1.bf16.msra.mxu1 %v721_v29 }
  0x24   :  { %656 = vmatpush3.bf16.msra.mxu0 %v724_v30  ;;  %675 = vmatprep.subr.bf16.mxu1 %v763_v32 }
  0x25   :  { %12 = vsyncpa [#allocation3], 0  ;;  %657 = vmatprep.subr.bf16.mxu0 %v763_v32  ;;  %v726_v35 = vld [vmem:[%s978_s3 + $0x10] sm:$0xff]   ;;  %v727_v36 = vld [vmem:[%s978_s3 + $0x18] sm:$0xff]   ;;  %vm407_vm1 = vcmask 1043456   ;;  %vm764_vm2 = vmmov 0  }
  0x26   :  { %327 = vmatmul.mubr.bf16.vlgmr.msra.gmra.mrb[0].mxu1 %v571_v33  ;;  %v728_v37 = vld [vmem:[%s978_s3 + $0x20] sm:$0xff]   ;;  %v729_v38 = vld [vmem:[%s978_s3 + $0x28] sm:$0xff]   ;;  %v730_v39 = vld [vmem:[%s978_s3 + $0x30] sm:$0xff]   ;;  %671 = vmatprep.mubr.msk.bf16.mxu0 %vm764_vm2, %v763_v32  ;;  %vm403_vm3 = vcmask 982016   ;;  %vm508_vm4 = vcmask 1041408   ;;  %vm504_vm5 = vcmask 687104  }
  0x27   :  { %v731_v40 = vld [vmem:[%s978_s3 + $0x38] ss:$0 sps:$4 sm:$0xff]   ;;  %687 = vmatprep.mubr.msk.bf16.mxu1 %vm764_vm2, %v763_v32  ;;  %v732_v42 = vld [vmem:[%s980_s5] sm:$0xff]   ;;  %v733_v43 = vld [vmem:[%s980_s5 + $0x8] sm:$0xff]   ;;  %vm552_vm6 = vcmask 80896  }
  0x28   :  { %658 = vmatpush3.bf16.msra.mxu0 %v725_v34  ;;  %v409_v41 = vsel %vm407_vm1, %v731_v40, 0  ;;  %676 = vmatpush3.bf16.msra.mxu1 %v732_v42  ;;  %v734_v44 = vld [vmem:[%s980_s5 + $0x10] sm:$0xff]   ;;  %v735_v45 = vld [vmem:[%s980_s5 + $0x18] sm:$0xff]   ;;  %v568_v48 = vld [vmem:[%s977_s2] ss:$0 sm:$0xff] }
  0x29   :  { %659 = vmatprep.subr.bf16.mxu0 %v763_v32  ;;  %677 = vmatprep.subr.bf16.mxu1 %v763_v32  ;;  %v736_v60 = vld [vmem:[%s980_s5 + $0x20] sm:$0xff]   ;;  %v737_v61 = vld [vmem:[%s980_s5 + $0x28] ss:$0 sps:$4 sm:$0x33]   ;;  %s765_s5 = smov [#allocation2]  }
  0x2a   :  { %v510_v62 = vsel %vm508_vm4, %v737_v61, 0  ;;  %v599_v63 = vld [vmem:[%s979_s4] ss:$0 sm:$0xff]  ;;  %s560_s14 = sshll.u32 %s765_s5, 4  ;;  %s561_s14 = int_to_ptr.vmem [resolvable:$true] %s560_s14 }
  0x2b   :  { %v609_v7 = vld [vmem:[%s981_s6] ss:$0 sm:$0xff]  ;;  %s738_s4 = scalar_lea.vmem %s561_s14, 128  ;;  %p743_p1 = scmp.lt.s32.totalorder %s561_s14, %s561_s14 }
  0x2c   :  { %660 = vmatpush3.bf16.msra.mxu0 %v726_v35  ;;  %678 = vmatpush3.bf16.msra.mxu1 %v733_v43  ;;  %p739_p0 = scmp.ne.s32.totalorder %s561_s14, %s738_s4  ;;  %p744_p2 = scmp.lt.s32.totalorder %s738_s4, %s738_s4 }
  0x2d   :  { %661 = vmatprep.subr.bf16.mxu0 %v763_v32  ;;  %679 = vmatprep.subr.bf16.mxu1 %v763_v32 }
  0x2e   :  { %p745_p3 = por %p744_p2, %p743_p1 }
  0x30   :  { %662 = vmatpush3.bf16.msra.mxu0 %v727_v36  ;;  %680 = vmatpush3.bf16.msra.mxu1 %v734_v44  ;;  %p746_p4 = pnand %p745_p3, %p739_p0 }
  0x31   :  { %663 = vmatprep.subr.bf16.mxu0 %v763_v32  ;;  %681 = vmatprep.subr.bf16.mxu1 %v763_v32 }
  0x34   :  { %664 = vmatpush3.bf16.msra.mxu0 %v728_v37  ;;  %682 = vmatpush3.bf16.msra.mxu1 %v735_v45 }
  0x35   :  { %665 = vmatprep.subr.bf16.mxu0 %v763_v32  ;;  %683 = vmatprep.subr.bf16.mxu1 %v763_v32 }
  0x38   :  { %666 = vmatpush3.bf16.msra.mxu0 %v729_v38  ;;  %684 = vmatpush3.bf16.msra.mxu1 %v736_v60 }
  0x39   :  { %667 = vmatprep.subr.bf16.mxu0 %v763_v32  ;;  %685 = vmatprep.subr.bf16.mxu1 %v763_v32 }
  0x3c   :  { %668 = vmatpush3.bf16.msra.mxu0 %v730_v39  ;;  %686 = vmatpush3.bf16.msra.mxu1 %v510_v62 }
  0x3d   :  { %669 = vmatprep.subr.bf16.mxu0 %v763_v32 }
  0x40   :  { %670 = vmatpush3.bf16.msra.mxu0 %v409_v41 }
  0xf6   :  { %v633_v46 = vpop.f32.mrb[0].mxu0 }
  0xf7   :  { %v634_v47 = vpop.f32.mrb[1].mxu0 }
  0xf8   :  { %v635_v49 = vadd.f32 %v634_v47, %v633_v46  ;;  %v636_v50 = vpop.f32.mrb[2].mxu0 }
  0xf9   :  { %v637_v51 = vpop.f32.mrb[3].mxu0  ;;  %v328_v52 = vpop.f32.mrb[0].mxu1 }
  0xfa   :  { %v289_v53 = vadd.f32 %v635_v49, %v568_v48  ;;  %v330_v54 = vpop.f32.mrb[1].mxu1 }
  0xfb   :  { %v331_v55 = vpop.f32.mrb[2].mxu1 }
  0xfc   :  { %v329_v56 = vadd.f32 %v328_v52, %v289_v53  ;;  %v332_v57 = vpop.f32.mrb[3].mxu1 }
  0xfe   :  { %v334_v58 = vmax.f32 %v329_v56, 0.0 }
 0x100   :  { %v335_v59 = vpack.c.bf16 %v334_v58, %v334_v58 }
 0x102   :  { %672 = vmatmul.mubr.msk.bf16.vlgmr.msra.gmra.mrb[4].mxu0 %vm403_vm3, %v335_v59 }
 0x1d5   :  { %v445_v0 = vpop.f32.mrb[4].mxu0 }
 0x1d6   :  { %v446_v1 = vadd.f32 %v599_v63, %v445_v0  ;;  %v673_v2 = vpop.f32.mrb[5].mxu0 }
 0x1d7   :  { %v448_v3 = vpop.f32.mrb[6].mxu0 }
 0x1d8   :  { %v451_v4 = vmax.f32 %v446_v1, 0.0  ;;  %v674_v5 = vpop.f32.mrb[7].mxu0 }
 0x1da   :  { %v452_v6 = vpack.c.bf16 %v451_v4, %v451_v4 }
 0x1dc   :  { %688 = vmatmul.mubr.msk.bf16.vlgmr.msra.gmra.mrb[4].mxu1 %vm504_vm5, %v452_v6 }
 0x2af   :  { %v546_v8 = vpop.f32.mrb[4].mxu1 }
 0x2b0   :  { %v547_v9 = vadd.f32 %v609_v7, %v546_v8  ;;  %v689_v10 = vpop.f32.mrb[5].mxu1 }
 0x2b1   :  { %v549_v11 = vpop.f32.mrb[6].mxu1 }
 0x2b2   :  { %v690_v12 = vpop.f32.mrb[7].mxu1  ;;  %553 = vst.msk [vmem:[#allocation2] sm:$0xff] %vm552_vm6, %v547_v9 }
 0x2b3   :  { %749 = shalt.err (!%p746_p4)
}
 0x2b4   :  { %s750_s6 = scalar_lea.hbm %s982_s7, 128 }
 0x2b5   :  { %p751_p5 = scmp.ne.s32.totalorder %s982_s7, %s750_s6  ;;  %p754_p6 = scmp.lt.u32.totalorder %s750_s6, %s982_s7 }
 0x2b7   :  { %p756_p7 = pnand %p754_p6, %p751_p5 }
 0x2b9   :  { %759 = shalt.err (!%p756_p7)
}
 0x2ba   :  { %563 = dma.vmem_to_hbm [thread:$0]  %s561_s14, 128, %s982_s7, [#allocation3]  }
 0x2bb   :  { %760 = dma.done.wait [#allocation3], 128  }
 0x2bc   :  { %761 = vsyncadd [#allocation3], 4294967168 }
 0x2bd   :  { %567 = vsyncpa [#allocation3], 1 }

</bundles_post_ra>
